<compile_context>
chip_gen: v5e
topology: v5e:2x2
jax: 0.10.0
libtpu: 0.0.40
codegen_flags: <defaults>
</compile_context>

<pallas_src>
import functools

import jax
import jax.numpy as jnp
from jax.experimental import pallas as pl
from jax.experimental.pallas import tpu as pltpu


# ---------------------------------------------------------------------------
# Kernel A: fused QKV projection (weight pre-transposed, Q columns pre-scaled)
# ---------------------------------------------------------------------------
def _qkv_proj_kernel(x_ref, w_ref, o_ref):
    # x_ref: (1, tn, C)   w_ref: (C, 3C)   o_ref: (1, tn, 3C)
    o_ref[0] = jnp.dot(
        x_ref[0], w_ref[...], preferred_element_type=jnp.float32
    ).astype(o_ref.dtype)


# ---------------------------------------------------------------------------
# Kernel B: flash-style attention over kv tiles + fused output projection
# ---------------------------------------------------------------------------
def _attn_proj_kernel(q_ref, k_ref, v_ref, wp_ref, bp_ref, o_ref,
                      m_sc, l_sc, acc_sc, *, num_heads):
    kv = pl.program_id(2)

    @pl.when(kv == 0)
    def _init():
        m_sc[...] = jnp.full(m_sc.shape, -jnp.inf, dtype=m_sc.dtype)
        l_sc[...] = jnp.zeros(l_sc.shape, dtype=l_sc.dtype)
        acc_sc[...] = jnp.zeros(acc_sc.shape, dtype=acc_sc.dtype)

    q = q_ref[0]            # (H, tq,  D)   scale already folded into W_q
    k = k_ref[0]            # (H, tkv, D)
    v = v_ref[0]            # (H, tkv, D)

    # All heads at once, no explicit K transpose: (H, tq, tkv) f32 scores.
    s = jnp.einsum('hqd,hkd->hqk', q, k, preferred_element_type=jnp.float32)

    m_prev = m_sc[...]
    m_new = jnp.maximum(m_prev, s.max(axis=-1, keepdims=True))
    alpha = jnp.exp(m_prev - m_new)
    p = jnp.exp(s - m_new)
    l_sc[...] = alpha * l_sc[...] + p.sum(axis=-1, keepdims=True)
    acc_sc[...] = alpha * acc_sc[...] + jnp.einsum(
        'hqk,hkd->hqd', p.astype(v.dtype), v,
        preferred_element_type=jnp.float32)
    m_sc[...] = m_new

    @pl.when(kv == pl.num_programs(2) - 1)
    def _finalize():
        # Softmax normalization via the (otherwise idle) EUP reciprocal slot.
        o = acc_sc[...] * pl.reciprocal(l_sc[...], approx=True)   # (H, tq, D)
        o = o.astype(wp_ref.dtype)
        # Fused output projection: Wp pre-reshaped to (H, D, C) on the host,
        # so concat(o_h, axis=-1) @ Wp^T  ==  sum_h o_h @ Wp[h].
        # Result is one lane-dense (tq, C) store (statically unrolled sum).
        y = jnp.dot(o[0], wp_ref[0], preferred_element_type=jnp.float32)
        for h in range(1, num_heads):
            y = y + jnp.dot(o[h], wp_ref[h], preferred_element_type=jnp.float32)
        o_ref[0] = (y + bp_ref[...]).astype(o_ref.dtype)


# ---------------------------------------------------------------------------
# Wrapper
# ---------------------------------------------------------------------------
def _pick_seq_tile(n, target):
    """Largest multiple-of-8 divisor of n that is <= target, else n (full)."""
    if n <= target:
        return n
    best = None
    for t in range(8, target + 1, 8):
        if n % t == 0:
            best = t
    return best if best is not None else n


def attention_pallas(x, w_qkv, w_proj, b_proj, *, num_heads, qk_scale=None,
                     compute_dtype=None, q_tile_target=256, kv_tile_target=256):
    """x: (B, N, C); w_qkv: (3C, C); w_proj: (C, C); b_proj: (1, C)."""
    B, N, C = x.shape
    assert C % num_heads == 0
    D = C // num_heads
    scale = qk_scale if qk_scale is not None else D ** (-0.5)
    cdt = compute_dtype if compute_dtype is not None else x.dtype

    # ---- one-time weight prep (layout plumbing + scale folding) ------------
    w_qkv_t = jnp.transpose(w_qkv).astype(jnp.float32)              # (C, 3C)
    scale_vec = jnp.concatenate([jnp.full((C,), scale, jnp.float32),
                                 jnp.ones((2 * C,), jnp.float32)])
    w_qkv_t = (w_qkv_t * scale_vec[None, :]).astype(cdt)            # Q pre-scaled
    w_proj_r = jnp.transpose(w_proj).reshape(num_heads, D, C).astype(cdt)
    b_proj_f32 = b_proj.reshape(1, C).astype(jnp.float32)
    x_c = x.astype(cdt)

    # ---- Kernel A: QKV projection ------------------------------------------
    tn = _pick_seq_tile(N, 512)
    qkv = pl.pallas_call(
        _qkv_proj_kernel,
        out_shape=jax.ShapeDtypeStruct((B, N, 3 * C), cdt),
        grid_spec=pltpu.PrefetchScalarGridSpec(
            num_scalar_prefetch=0,
            grid=(B, N // tn),
            in_specs=[
                pl.BlockSpec((1, tn, C), lambda b, i: (b, i, 0)),
                pl.BlockSpec((C, 3 * C), lambda b, i: (0, 0)),
            ],
            out_specs=pl.BlockSpec((1, tn, 3 * C), lambda b, i: (b, i, 0)),
        ),
        compiler_params=pltpu.CompilerParams(
            dimension_semantics=("parallel", "parallel")),
    )(x_c, w_qkv_t)

    # ---- head split/transpose (pure layout plumbing, fused under jit) ------
    qkv = qkv.reshape(B, N, 3, num_heads, D).transpose(2, 0, 3, 1, 4)
    q, k, v = qkv[0], qkv[1], qkv[2]                                 # (B,H,N,D)

    # ---- Kernel B: flash attention + fused output projection ---------------
    tq = _pick_seq_tile(N, q_tile_target)
    tkv = _pick_seq_tile(N, kv_tile_target)
    kernel = functools.partial(_attn_proj_kernel, num_heads=num_heads)

    out = pl.pallas_call(
        kernel,
        out_shape=jax.ShapeDtypeStruct((B, N, C), x.dtype),
        grid_spec=pltpu.PrefetchScalarGridSpec(
            num_scalar_prefetch=0,
            grid=(B, N // tq, N // tkv),
            in_specs=[
                pl.BlockSpec((1, num_heads, tq, D), lambda b, i, j: (b, 0, i, 0)),
                pl.BlockSpec((1, num_heads, tkv, D), lambda b, i, j: (b, 0, j, 0)),
                pl.BlockSpec((1, num_heads, tkv, D), lambda b, i, j: (b, 0, j, 0)),
                pl.BlockSpec((num_heads, D, C), lambda b, i, j: (0, 0, 0)),
                pl.BlockSpec((1, C), lambda b, i, j: (0, 0)),
            ],
            out_specs=pl.BlockSpec((1, tq, C), lambda b, i, j: (b, i, 0)),
            scratch_shapes=[
                pltpu.VMEM((num_heads, tq, 1), jnp.float32),   # running max
                pltpu.VMEM((num_heads, tq, 1), jnp.float32),   # running sum
                pltpu.VMEM((num_heads, tq, D), jnp.float32),   # output accum
            ],
        ),
        compiler_params=pltpu.CompilerParams(
            dimension_semantics=("parallel", "parallel", "arbitrary")),
    )(q, k, v, w_proj_r, b_proj_f32)
    return out


# ---------------------------------------------------------------------------
# Plain-JAX reference mirroring the PyTorch forward
# ---------------------------------------------------------------------------
def attention_ref(x, w_qkv, w_proj, b_proj, *, num_heads):
    B, N, C = x.shape
    head_dim = C // num_heads
    scale = head_dim ** (-0.5)
    qkv = jnp.einsum('bnc,dc->bnd', x, w_qkv)                  # (B, N, 3C)
    qkv = qkv.reshape(B, N, 3, num_heads, head_dim).transpose(2, 0, 3, 1, 4)
    q, k, v = qkv[0], qkv[1], qkv[2]                           # (B, H, N, D)
    attn = jnp.einsum('bhnd,bhmd->bhnm', q, k) * scale
    attn = jax.nn.softmax(attn, axis=-1)
    out = jnp.einsum('bhnm,bhmd->bhnd', attn, v)
    out = out.transpose(0, 2, 1, 3).reshape(B, N, C)
    return jnp.einsum('bnc,dc->bnd', out, w_proj) + b_proj[0]


if __name__ == "__main__":
    B, N, C = 2, 16, 64
    num_heads = 8

    key = jax.random.PRNGKey(0)
    kx, kqkv, kproj, kb = jax.random.split(key, 4)

    x = jax.random.normal(kx, (B, N, C), dtype=jnp.float32)
    # nn.Linear-shaped synthetic parameters: (out_features, in_features).
    w_qkv = jax.random.normal(kqkv, (3 * C, C), dtype=jnp.float32) * (C ** -0.5)
    w_proj = jax.random.normal(kproj, (C, C), dtype=jnp.float32) * (C ** -0.5)
    b_proj = jax.random.normal(kb, (1, C), dtype=jnp.float32) * 0.02

    ref = attention_ref(x, w_qkv, w_proj, b_proj, num_heads=num_heads)

    # fp32 path (tolerance relaxed slightly vs exact because the softmax
    # normalization uses the approximate EUP reciprocal).
    attn_f32 = jax.jit(functools.partial(attention_pallas, num_heads=num_heads))
    out = attn_f32(x, w_qkv, w_proj, b_proj)
    out = jax.block_until_ready(out)
    assert out.shape == (B, N, C)
    assert jnp.allclose(out, ref, atol=1e-2, rtol=1e-2), \
        f"fp32 max abs diff {jnp.max(jnp.abs(out - ref))}"

    # bf16 MXU path (activations + weights cast once in the wrapper,
    # f32 accumulation everywhere).
    attn_bf16 = jax.jit(functools.partial(attention_pallas, num_heads=num_heads,
                                          compute_dtype=jnp.bfloat16))
    out_bf16 = attn_bf16(x, w_qkv, w_proj, b_proj)
    out_bf16 = jax.block_until_ready(out_bf16)
    rel_err = jnp.linalg.norm(out_bf16 - ref) / jnp.linalg.norm(ref)
    assert rel_err < 0.1, f"bf16 relative error {rel_err}"

    print("KERNEL_OK")
</pallas_src>

<mosaic_0001>
module attributes {stable_mosaic.version = 11 : i64} {
  func.func @_qkv_proj_kernel(%arg0: i32, %arg1: i32, %arg2: memref<1x16x64xf32, #tpu.memory_space<vmem>>, %arg3: memref<64x192xf32, #tpu.memory_space<vmem>>, %arg4: memref<1x16x192xf32, #tpu.memory_space<vmem>>) attributes {dimension_semantics = [#tpu.dimension_semantics<parallel>, #tpu.dimension_semantics<parallel>], iteration_bounds = array<i64: 2, 1>, scalar_prefetch = 0 : i64, scratch_operands = 0 : i64, tpu.core_type = #tpu.core_type<tc>, window_params = [{transform_indices = @transform_0, window_bounds = array<i64: 1, 16, 64>}, {pipeline_mode = #tpu.pipeline_mode<synchronous>, transform_indices = @transform_1, window_bounds = array<i64: 64, 192>}, {transform_indices = @transform_2, window_bounds = array<i64: 1, 16, 192>}]} {
    %c0 = arith.constant 0 : index
    %c0_0 = arith.constant 0 : index
    %c0_1 = arith.constant 0 : index
    %0 = vector.load %arg2[%c0, %c0_0, %c0_1] : memref<1x16x64xf32, #tpu.memory_space<vmem>>, vector<1x16x64xf32>
    %1 = vector.shape_cast %0 : vector<1x16x64xf32> to vector<16x64xf32>
    %c0_2 = arith.constant 0 : index
    %c0_3 = arith.constant 0 : index
    %2 = vector.load %arg3[%c0_2, %c0_3] : memref<64x192xf32, #tpu.memory_space<vmem>>, vector<64x192xf32>
    %cst = arith.constant dense<0.000000e+00> : vector<16x192xf32>
    %3 = tpu.matmul %1, %2, %cst {dimension_numbers = #tpu.dot_dimension_numbers<[1], [0], [0], [1], [0, 0, 1, 1], [], []>} : vector<16x64xf32>, vector<64x192xf32>, vector<16x192xf32> -> vector<16x192xf32>
    %c0_4 = arith.constant 0 : index
    %c0_5 = arith.constant 0 : index
    %c0_6 = arith.constant 0 : index
    %4 = vector.load %arg4[%c0_4, %c0_5, %c0_6] : memref<1x16x192xf32, #tpu.memory_space<vmem>>, vector<1x16x192xf32>
    %5 = vector.shape_cast %4 : vector<1x16x192xf32> to vector<16x192xf32>
    %6 = vector.shape_cast %3 : vector<16x192xf32> to vector<1x16x192xf32>
    tpu.vector_store %arg4[%c0_4, %c0_5, %c0_6], %6 {strides = array<i32>} : memref<1x16x192xf32, #tpu.memory_space<vmem>>, vector<1x16x192xf32>,
    return
  }
  func.func @transform_0(%arg0: i32, %arg1: i32) -> (i32, i32, i32) {
    %c0_i32 = arith.constant 0 : i32
    %c0_i32_0 = arith.constant 0 : i32
    return %arg0, %arg1, %c0_i32 : i32, i32, i32
  }
  func.func @transform_1(%arg0: i32, %arg1: i32) -> (i32, i32) {
    %c0_i32 = arith.constant 0 : i32
    %c0_i32_0 = arith.constant 0 : i32
    %c0_i32_1 = arith.constant 0 : i32
    return %c0_i32, %c0_i32_0 : i32, i32
  }
  func.func @transform_2(%arg0: i32, %arg1: i32) -> (i32, i32, i32) {
    %c0_i32 = arith.constant 0 : i32
    %c0_i32_0 = arith.constant 0 : i32
    return %arg0, %arg1, %c0_i32 : i32, i32, i32
  }
}

module attributes {stable_mosaic.version = 11 : i64} {
  func.func @_attn_proj_kernel(%arg0: i32, %arg1: i32, %arg2: i32, %arg3: memref<1x8x16x8xf32, #tpu.memory_space<vmem>>, %arg4: memref<1x8x16x8xf32, #tpu.memory_space<vmem>>, %arg5: memref<1x8x16x8xf32, #tpu.memory_space<vmem>>, %arg6: memref<8x8x64xf32, #tpu.memory_space<vmem>>, %arg7: memref<1x64xf32, #tpu.memory_space<vmem>>, %arg8: memref<1x16x64xf32, #tpu.memory_space<vmem>>, %arg9: memref<8x16x1xf32, #tpu.memory_space<vmem>>, %arg10: memref<8x16x1xf32, #tpu.memory_space<vmem>>, %arg11: memref<8x16x8xf32, #tpu.memory_space<vmem>>) attributes {dimension_semantics = [#tpu.dimension_semantics<parallel>, #tpu.dimension_semantics<parallel>, #tpu.dimension_semantics<arbitrary>], iteration_bounds = array<i64: 2, 1, 1>, scalar_prefetch = 0 : i64, scratch_operands = 3 : i64, tpu.core_type = #tpu.core_type<tc>, window_params = [{transform_indices = @transform_0, window_bounds = array<i64: 1, 8, 16, 8>}, {transform_indices = @transform_1, window_bounds = array<i64: 1, 8, 16, 8>}, {transform_indices = @transform_2, window_bounds = array<i64: 1, 8, 16, 8>}, {pipeline_mode = #tpu.pipeline_mode<synchronous>, transform_indices = @transform_3, window_bounds = array<i64: 8, 8, 64>}, {pipeline_mode = #tpu.pipeline_mode<synchronous>, transform_indices = @transform_4, window_bounds = array<i64: 1, 64>}, {transform_indices = @transform_5, window_bounds = array<i64: 1, 16, 64>}]} {
    %c0_i32 = arith.constant 0 : i32
    %0 = arith.cmpi eq, %arg2, %c0_i32 : i32
    %1 = arith.extui %0 : i1 to i32
    %c0_i32_0 = arith.constant 0 : i32
    %2 = arith.cmpi ne, %1, %c0_i32_0 : i32
    scf.if %2 {
      %cst_35 = arith.constant 0xFF800000 : f32
      %35 = vector.broadcast %cst_35 : f32 to vector<8x16x1xf32>
      %c0_36 = arith.constant 0 : index
      %c0_37 = arith.constant 0 : index
      %c0_38 = arith.constant 0 : index
      %36 = vector.load %arg9[%c0_36, %c0_37, %c0_38] : memref<8x16x1xf32, #tpu.memory_space<vmem>>, vector<8x16x1xf32>
      tpu.vector_store %arg9[%c0_36, %c0_37, %c0_38], %35 {strides = array<i32>} : memref<8x16x1xf32, #tpu.memory_space<vmem>>, vector<8x16x1xf32>,
      %cst_39 = arith.constant 0.000000e+00 : f32
      %37 = vector.broadcast %cst_39 : f32 to vector<8x16x1xf32>
      %c0_40 = arith.constant 0 : index
      %c0_41 = arith.constant 0 : index
      %c0_42 = arith.constant 0 : index
      %38 = vector.load %arg10[%c0_40, %c0_41, %c0_42] : memref<8x16x1xf32, #tpu.memory_space<vmem>>, vector<8x16x1xf32>
      tpu.vector_store %arg10[%c0_40, %c0_41, %c0_42], %37 {strides = array<i32>} : memref<8x16x1xf32, #tpu.memory_space<vmem>>, vector<8x16x1xf32>,
      %cst_43 = arith.constant 0.000000e+00 : f32
      %39 = vector.broadcast %cst_43 : f32 to vector<8x16x8xf32>
      %c0_44 = arith.constant 0 : index
      %c0_45 = arith.constant 0 : index
      %c0_46 = arith.constant 0 : index
      %40 = vector.load %arg11[%c0_44, %c0_45, %c0_46] : memref<8x16x8xf32, #tpu.memory_space<vmem>>, vector<8x16x8xf32>
      tpu.vector_store %arg11[%c0_44, %c0_45, %c0_46], %39 {strides = array<i32>} : memref<8x16x8xf32, #tpu.memory_space<vmem>>, vector<8x16x8xf32>,
    } else {
    }
    %c0 = arith.constant 0 : index
    %c0_1 = arith.constant 0 : index
    %c0_2 = arith.constant 0 : index
    %c0_3 = arith.constant 0 : index
    %3 = vector.load %arg3[%c0, %c0_1, %c0_2, %c0_3] : memref<1x8x16x8xf32, #tpu.memory_space<vmem>>, vector<1x8x16x8xf32>
    %4 = vector.shape_cast %3 : vector<1x8x16x8xf32> to vector<8x16x8xf32>
    %c0_4 = arith.constant 0 : index
    %c0_5 = arith.constant 0 : index
    %c0_6 = arith.constant 0 : index
    %c0_7 = arith.constant 0 : index
    %5 = vector.load %arg4[%c0_4, %c0_5, %c0_6, %c0_7] : memref<1x8x16x8xf32, #tpu.memory_space<vmem>>, vector<1x8x16x8xf32>
    %6 = vector.shape_cast %5 : vector<1x8x16x8xf32> to vector<8x16x8xf32>
    %c0_8 = arith.constant 0 : index
    %c0_9 = arith.constant 0 : index
    %c0_10 = arith.constant 0 : index
    %c0_11 = arith.constant 0 : index
    %7 = vector.load %arg5[%c0_8, %c0_9, %c0_10, %c0_11] : memref<1x8x16x8xf32, #tpu.memory_space<vmem>>, vector<1x8x16x8xf32>
    %8 = vector.shape_cast %7 : vector<1x8x16x8xf32> to vector<8x16x8xf32>
    "tpu.trace_start"() <{level = 10 : i32, message = "hqd,hkd->hqk"}> : () -> ()
    %cst = arith.constant dense<0.000000e+00> : vector<8x16x16xf32>
    %9 = tpu.matmul %4, %6, %cst {dimension_numbers = #tpu.dot_dimension_numbers<[2], [2], [1], [1], [0, 0, 0, 1, 1, 1], [0], [0]>} : vector<8x16x8xf32>, vector<8x16x8xf32>, vector<8x16x16xf32> -> vector<8x16x16xf32>
    "tpu.trace_stop"() : () -> ()
    %c0_12 = arith.constant 0 : index
    %c0_13 = arith.constant 0 : index
    %c0_14 = arith.constant 0 : index
    %10 = vector.load %arg9[%c0_12, %c0_13, %c0_14] : memref<8x16x1xf32, #tpu.memory_space<vmem>>, vector<8x16x1xf32>
    %cst_15 = arith.constant dense<0xFF800000> : vector<8x16xf32>
    %11 = vector.multi_reduction <maximumf>, %9, %cst_15 [2] : vector<8x16x16xf32> to vector<8x16xf32>
    %12 = vector.shape_cast %11 : vector<8x16xf32> to vector<8x16x1xf32>
    %13 = arith.maximumf %10, %12 : vector<8x16x1xf32>
    %14 = arith.subf %10, %13 : vector<8x16x1xf32>
    %15 = math.exp %14 : vector<8x16x1xf32>
    %16 = vector.broadcast %13 : vector<8x16x1xf32> to vector<8x16x16xf32>
    %17 = arith.subf %9, %16 : vector<8x16x16xf32>
    %18 = math.exp %17 : vector<8x16x16xf32>
    %c0_16 = arith.constant 0 : index
    %c0_17 = arith.constant 0 : index
    %c0_18 = arith.constant 0 : index
    %19 = vector.load %arg10[%c0_16, %c0_17, %c0_18] : memref<8x16x1xf32, #tpu.memory_space<vmem>>, vector<8x16x1xf32>
    %20 = arith.mulf %15, %19 : vector<8x16x1xf32>
    %cst_19 = arith.constant dense<0.000000e+00> : vector<8x16xf32>
    %21 = vector.multi_reduction <add>, %18, %cst_19 [2] : vector<8x16x16xf32> to vector<8x16xf32>
    %22 = vector.shape_cast %21 : vector<8x16xf32> to vector<8x16x1xf32>
    %23 = arith.addf %20, %22 : vector<8x16x1xf32>
    %c0_20 = arith.constant 0 : index
    %c0_21 = arith.constant 0 : index
    %c0_22 = arith.constant 0 : index
    %24 = vector.load %arg10[%c0_20, %c0_21, %c0_22] : memref<8x16x1xf32, #tpu.memory_space<vmem>>, vector<8x16x1xf32>
    tpu.vector_store %arg10[%c0_20, %c0_21, %c0_22], %23 {strides = array<i32>} : memref<8x16x1xf32, #tpu.memory_space<vmem>>, vector<8x16x1xf32>,
    %c0_23 = arith.constant 0 : index
    %c0_24 = arith.constant 0 : index
    %c0_25 = arith.constant 0 : index
    %25 = vector.load %arg11[%c0_23, %c0_24, %c0_25] : memref<8x16x8xf32, #tpu.memory_space<vmem>>, vector<8x16x8xf32>
    %26 = vector.broadcast %15 : vector<8x16x1xf32> to vector<8x16x8xf32>
    %27 = arith.mulf %26, %25 : vector<8x16x8xf32>
    "tpu.trace_start"() <{level = 10 : i32, message = "hqk,hkd->hqd"}> : () -> ()
    %cst_26 = arith.constant dense<0.000000e+00> : vector<8x16x8xf32>
    %28 = tpu.matmul %18, %8, %cst_26 {dimension_numbers = #tpu.dot_dimension_numbers<[2], [1], [1], [2], [0, 0, 0, 1, 1, 2], [0], [0]>} : vector<8x16x16xf32>, vector<8x16x8xf32>, vector<8x16x8xf32> -> vector<8x16x8xf32>
    "tpu.trace_stop"() : () -> ()
    %29 = arith.addf %27, %28 : vector<8x16x8xf32>
    %c0_27 = arith.constant 0 : index
    %c0_28 = arith.constant 0 : index
    %c0_29 = arith.constant 0 : index
    %30 = vector.load %arg11[%c0_27, %c0_28, %c0_29] : memref<8x16x8xf32, #tpu.memory_space<vmem>>, vector<8x16x8xf32>
    tpu.vector_store %arg11[%c0_27, %c0_28, %c0_29], %29 {strides = array<i32>} : memref<8x16x8xf32, #tpu.memory_space<vmem>>, vector<8x16x8xf32>,
    %c0_30 = arith.constant 0 : index
    %c0_31 = arith.constant 0 : index
    %c0_32 = arith.constant 0 : index
    %31 = vector.load %arg9[%c0_30, %c0_31, %c0_32] : memref<8x16x1xf32, #tpu.memory_space<vmem>>, vector<8x16x1xf32>
    tpu.vector_store %arg9[%c0_30, %c0_31, %c0_32], %13 {strides = array<i32>} : memref<8x16x1xf32, #tpu.memory_space<vmem>>, vector<8x16x1xf32>,
    %c0_i32_33 = arith.constant 0 : i32
    %32 = arith.cmpi eq, %arg2, %c0_i32_33 : i32
    %33 = arith.extui %32 : i1 to i32
    %c0_i32_34 = arith.constant 0 : i32
    %34 = arith.cmpi ne, %33, %c0_i32_34 : i32
    scf.if %34 {
      %c0_35 = arith.constant 0 : index
      %c0_36 = arith.constant 0 : index
      %c0_37 = arith.constant 0 : index
      %35 = vector.load %arg11[%c0_35, %c0_36, %c0_37] : memref<8x16x8xf32, #tpu.memory_space<vmem>>, vector<8x16x8xf32>
      %c0_38 = arith.constant 0 : index
      %c0_39 = arith.constant 0 : index
      %c0_40 = arith.constant 0 : index
      %36 = vector.load %arg10[%c0_38, %c0_39, %c0_40] : memref<8x16x1xf32, #tpu.memory_space<vmem>>, vector<8x16x1xf32>
      %37 = tpu.reciprocal %36 {approx = true} : vector<8x16x1xf32> -> vector<8x16x1xf32>
      %38 = vector.broadcast %37 : vector<8x16x1xf32> to vector<8x16x8xf32>
      %39 = arith.mulf %35, %38 : vector<8x16x8xf32>
      %40 = vector.extract_strided_slice %39 {offsets = [0, 0, 0], sizes = [1, 16, 8], strides = [1, 1, 1]} : vector<8x16x8xf32> to vector<1x16x8xf32>
      %41 = vector.shape_cast %40 : vector<1x16x8xf32> to vector<16x8xf32>
      %c0_41 = arith.constant 0 : index
      %c0_42 = arith.constant 0 : index
      %c0_43 = arith.constant 0 : index
      %42 = vector.load %arg6[%c0_41, %c0_42, %c0_43] : memref<8x8x64xf32, #tpu.memory_space<vmem>>, vector<1x8x64xf32>
      %43 = vector.shape_cast %42 : vector<1x8x64xf32> to vector<8x64xf32>
      %cst_44 = arith.constant dense<0.000000e+00> : vector<16x64xf32>
      %44 = tpu.matmul %41, %43, %cst_44 {dimension_numbers = #tpu.dot_dimension_numbers<[1], [0], [0], [1], [0, 0, 1, 1], [], []>} : vector<16x8xf32>, vector<8x64xf32>, vector<16x64xf32> -> vector<16x64xf32>
      %45 = vector.extract_strided_slice %39 {offsets = [1, 0, 0], sizes = [1, 16, 8], strides = [1, 1, 1]} : vector<8x16x8xf32> to vector<1x16x8xf32>
      %46 = vector.shape_cast %45 : vector<1x16x8xf32> to vector<16x8xf32>
      %c1 = arith.constant 1 : index
      %c0_45 = arith.constant 0 : index
      %c0_46 = arith.constant 0 : index
      %47 = vector.load %arg6[%c1, %c0_45, %c0_46] : memref<8x8x64xf32, #tpu.memory_space<vmem>>, vector<1x8x64xf32>
      %48 = vector.shape_cast %47 : vector<1x8x64xf32> to vector<8x64xf32>
      %cst_47 = arith.constant dense<0.000000e+00> : vector<16x64xf32>
      %49 = tpu.matmul %46, %48, %cst_47 {dimension_numbers = #tpu.dot_dimension_numbers<[1], [0], [0], [1], [0, 0, 1, 1], [], []>} : vector<16x8xf32>, vector<8x64xf32>, vector<16x64xf32> -> vector<16x64xf32>
      %50 = arith.addf %44, %49 : vector<16x64xf32>
      %51 = vector.extract_strided_slice %39 {offsets = [2, 0, 0], sizes = [1, 16, 8], strides = [1, 1, 1]} : vector<8x16x8xf32> to vector<1x16x8xf32>
      %52 = vector.shape_cast %51 : vector<1x16x8xf32> to vector<16x8xf32>
      %c2 = arith.constant 2 : index
      %c0_48 = arith.constant 0 : index
      %c0_49 = arith.constant 0 : index
      %53 = vector.load %arg6[%c2, %c0_48, %c0_49] : memref<8x8x64xf32, #tpu.memory_space<vmem>>, vector<1x8x64xf32>
      %54 = vector.shape_cast %53 : vector<1x8x64xf32> to vector<8x64xf32>
      %cst_50 = arith.constant dense<0.000000e+00> : vector<16x64xf32>
      %55 = tpu.matmul %52, %54, %cst_50 {dimension_numbers = #tpu.dot_dimension_numbers<[1], [0], [0], [1], [0, 0, 1, 1], [], []>} : vector<16x8xf32>, vector<8x64xf32>, vector<16x64xf32> -> vector<16x64xf32>
      %56 = arith.addf %50, %55 : vector<16x64xf32>
      %57 = vector.extract_strided_slice %39 {offsets = [3, 0, 0], sizes = [1, 16, 8], strides = [1, 1, 1]} : vector<8x16x8xf32> to vector<1x16x8xf32>
      %58 = vector.shape_cast %57 : vector<1x16x8xf32> to vector<16x8xf32>
      %c3 = arith.constant 3 : index
      %c0_51 = arith.constant 0 : index
      %c0_52 = arith.constant 0 : index
      %59 = vector.load %arg6[%c3, %c0_51, %c0_52] : memref<8x8x64xf32, #tpu.memory_space<vmem>>, vector<1x8x64xf32>
      %60 = vector.shape_cast %59 : vector<1x8x64xf32> to vector<8x64xf32>
      %cst_53 = arith.constant dense<0.000000e+00> : vector<16x64xf32>
      %61 = tpu.matmul %58, %60, %cst_53 {dimension_numbers = #tpu.dot_dimension_numbers<[1], [0], [0], [1], [0, 0, 1, 1], [], []>} : vector<16x8xf32>, vector<8x64xf32>, vector<16x64xf32> -> vector<16x64xf32>
      %62 = arith.addf %56, %61 : vector<16x64xf32>
      %63 = vector.extract_strided_slice %39 {offsets = [4, 0, 0], sizes = [1, 16, 8], strides = [1, 1, 1]} : vector<8x16x8xf32> to vector<1x16x8xf32>
      %64 = vector.shape_cast %63 : vector<1x16x8xf32> to vector<16x8xf32>
      %c4 = arith.constant 4 : index
      %c0_54 = arith.constant 0 : index
      %c0_55 = arith.constant 0 : index
      %65 = vector.load %arg6[%c4, %c0_54, %c0_55] : memref<8x8x64xf32, #tpu.memory_space<vmem>>, vector<1x8x64xf32>
      %66 = vector.shape_cast %65 : vector<1x8x64xf32> to vector<8x64xf32>
      %cst_56 = arith.constant dense<0.000000e+00> : vector<16x64xf32>
      %67 = tpu.matmul %64, %66, %cst_56 {dimension_numbers = #tpu.dot_dimension_numbers<[1], [0], [0], [1], [0, 0, 1, 1], [], []>} : vector<16x8xf32>, vector<8x64xf32>, vector<16x64xf32> -> vector<16x64xf32>
      %68 = arith.addf %62, %67 : vector<16x64xf32>
      %69 = vector.extract_strided_slice %39 {offsets = [5, 0, 0], sizes = [1, 16, 8], strides = [1, 1, 1]} : vector<8x16x8xf32> to vector<1x16x8xf32>
      %70 = vector.shape_cast %69 : vector<1x16x8xf32> to vector<16x8xf32>
      %c5 = arith.constant 5 : index
      %c0_57 = arith.constant 0 : index
      %c0_58 = arith.constant 0 : index
      %71 = vector.load %arg6[%c5, %c0_57, %c0_58] : memref<8x8x64xf32, #tpu.memory_space<vmem>>, vector<1x8x64xf32>
      %72 = vector.shape_cast %71 : vector<1x8x64xf32> to vector<8x64xf32>
      %cst_59 = arith.constant dense<0.000000e+00> : vector<16x64xf32>
      %73 = tpu.matmul %70, %72, %cst_59 {dimension_numbers = #tpu.dot_dimension_numbers<[1], [0], [0], [1], [0, 0, 1, 1], [], []>} : vector<16x8xf32>, vector<8x64xf32>, vector<16x64xf32> -> vector<16x64xf32>
      %74 = arith.addf %68, %73 : vector<16x64xf32>
      %75 = vector.extract_strided_slice %39 {offsets = [6, 0, 0], sizes = [1, 16, 8], strides = [1, 1, 1]} : vector<8x16x8xf32> to vector<1x16x8xf32>
      %76 = vector.shape_cast %75 : vector<1x16x8xf32> to vector<16x8xf32>
      %c6 = arith.constant 6 : index
      %c0_60 = arith.constant 0 : index
      %c0_61 = arith.constant 0 : index
      %77 = vector.load %arg6[%c6, %c0_60, %c0_61] : memref<8x8x64xf32, #tpu.memory_space<vmem>>, vector<1x8x64xf32>
      %78 = vector.shape_cast %77 : vector<1x8x64xf32> to vector<8x64xf32>
      %cst_62 = arith.constant dense<0.000000e+00> : vector<16x64xf32>
      %79 = tpu.matmul %76, %78, %cst_62 {dimension_numbers = #tpu.dot_dimension_numbers<[1], [0], [0], [1], [0, 0, 1, 1], [], []>} : vector<16x8xf32>, vector<8x64xf32>, vector<16x64xf32> -> vector<16x64xf32>
      %80 = arith.addf %74, %79 : vector<16x64xf32>
      %81 = vector.extract_strided_slice %39 {offsets = [7, 0, 0], sizes = [1, 16, 8], strides = [1, 1, 1]} : vector<8x16x8xf32> to vector<1x16x8xf32>
      %82 = vector.shape_cast %81 : vector<1x16x8xf32> to vector<16x8xf32>
      %c7 = arith.constant 7 : index
      %c0_63 = arith.constant 0 : index
      %c0_64 = arith.constant 0 : index
      %83 = vector.load %arg6[%c7, %c0_63, %c0_64] : memref<8x8x64xf32, #tpu.memory_space<vmem>>, vector<1x8x64xf32>
      %84 = vector.shape_cast %83 : vector<1x8x64xf32> to vector<8x64xf32>
      %cst_65 = arith.constant dense<0.000000e+00> : vector<16x64xf32>
      %85 = tpu.matmul %82, %84, %cst_65 {dimension_numbers = #tpu.dot_dimension_numbers<[1], [0], [0], [1], [0, 0, 1, 1], [], []>} : vector<16x8xf32>, vector<8x64xf32>, vector<16x64xf32> -> vector<16x64xf32>
      %86 = arith.addf %80, %85 : vector<16x64xf32>
      %c0_66 = arith.constant 0 : index
      %c0_67 = arith.constant 0 : index
      %87 = vector.load %arg7[%c0_66, %c0_67] : memref<1x64xf32, #tpu.memory_space<vmem>>, vector<1x64xf32>
      %88 = vector.broadcast %87 : vector<1x64xf32> to vector<16x64xf32>
      %89 = arith.addf %86, %88 : vector<16x64xf32>
      %c0_68 = arith.constant 0 : index
      %c0_69 = arith.constant 0 : index
      %c0_70 = arith.constant 0 : index
      %90 = vector.load %arg8[%c0_68, %c0_69, %c0_70] : memref<1x16x64xf32, #tpu.memory_space<vmem>>, vector<1x16x64xf32>
      %91 = vector.shape_cast %90 : vector<1x16x64xf32> to vector<16x64xf32>
      %92 = vector.shape_cast %89 : vector<16x64xf32> to vector<1x16x64xf32>
      tpu.vector_store %arg8[%c0_68, %c0_69, %c0_70], %92 {strides = array<i32>} : memref<1x16x64xf32, #tpu.memory_space<vmem>>, vector<1x16x64xf32>,
    } else {
    }
    return
  }
  func.func @transform_0(%arg0: i32, %arg1: i32, %arg2: i32) -> (i32, i32, i32, i32) {
    %c0_i32 = arith.constant 0 : i32
    %c0_i32_0 = arith.constant 0 : i32
    %c0_i32_1 = arith.constant 0 : i32
    return %arg0, %c0_i32, %arg1, %c0_i32_0 : i32, i32, i32, i32
  }
  func.func @transform_1(%arg0: i32, %arg1: i32, %arg2: i32) -> (i32, i32, i32, i32) {
    %c0_i32 = arith.constant 0 : i32
    %c0_i32_0 = arith.constant 0 : i32
    %c0_i32_1 = arith.constant 0 : i32
    return %arg0, %c0_i32, %arg2, %c0_i32_0 : i32, i32, i32, i32
  }
  func.func @transform_2(%arg0: i32, %arg1: i32, %arg2: i32) -> (i32, i32, i32, i32) {
    %c0_i32 = arith.constant 0 : i32
    %c0_i32_0 = arith.constant 0 : i32
    %c0_i32_1 = arith.constant 0 : i32
    return %arg0, %c0_i32, %arg2, %c0_i32_0 : i32, i32, i32, i32
  }
  func.func @transform_3(%arg0: i32, %arg1: i32, %arg2: i32) -> (i32, i32, i32) {
    %c0_i32 = arith.constant 0 : i32
    %c0_i32_0 = arith.constant 0 : i32
    %c0_i32_1 = arith.constant 0 : i32
    %c0_i32_2 = arith.constant 0 : i32
    return %c0_i32, %c0_i32_0, %c0_i32_1 : i32, i32, i32
  }
  func.func @transform_4(%arg0: i32, %arg1: i32, %arg2: i32) -> (i32, i32) {
    %c0_i32 = arith.constant 0 : i32
    %c0_i32_0 = arith.constant 0 : i32
    %c0_i32_1 = arith.constant 0 : i32
    return %c0_i32, %c0_i32_0 : i32, i32
  }
  func.func @transform_5(%arg0: i32, %arg1: i32, %arg2: i32) -> (i32, i32, i32) {
    %c0_i32 = arith.constant 0 : i32
    %c0_i32_0 = arith.constant 0 : i32
    return %arg0, %arg1, %c0_i32 : i32, i32, i32
  }
}

</mosaic_0001>

<bundles_post_ra>
// kernel: attention_pallas.2
= control target key start
LH: loop header
LB: loop body
LE: loop exit
PB: predicated region body
PF: predicated region fallthrough
CT: control target
= control target key end

     0   :  { %s449_s9 = smov 0   ;;  %s451_s10 = smov 0   ;;  %s540_s0 = inlined_call_operand.vmem [shape: f32[2,16,64], index: 0, kind: input, shape index: {}]   ;;  %s541_s1 = inlined_call_operand.vmem [shape: f32[64,192], index: 1, kind: input, shape index: {}]   ;;  %s542_s2 = inlined_call_operand.vmem [shape: f32[2,16,192], index: 2, kind: output, shape index: {}]  }
   0x1   :  { %s453_s11 = smov 0  }
   0x2 LB: > { %s24_s12 = sadd.s32 1, %s428_s10  ;;  %p357_p0 = scmp.ge.s32.totalorder %s432_s11, 1  ;;  %s432_s11 = sphi %s453_s11, %s12_s11   ;;  %s428_s10 = sphi %s451_s10, %s544_s10   ;;  %s424_s9 = sphi %s449_s9, %s543_s9  }
   0x3   : > { %p26_p1 = scmp.ge.s32.totalorder %s24_s12, 2  ;;  %p133_p2 = scmp.lt.s32.totalorder %s432_s11, 3 }
   0x5   : > { %s546_s12 = smov (%p26_p1, %s24_s12), 0  ;;  %p134_p3 = pnand %p357_p0, %p133_p2 }
   0x6   : > { %p165_p4 = scmp.lt.s32.totalorder (!%p134_p3), %s424_s9, 1 }
   0x7   : > { %137 = sbr.rel (%p134_p3) target bundleno = 162 (0xa2), region = 28 }
   0xc   : > { %v201_v0 = vld [vmem:[%s541_s1 + $0x70] sm:$0xff]  ;;  %v202_v1 = vld [vmem:[%s541_s1 + $0x78] sm:$0xff]  ;;  %v199_v2 = vld [vmem:[%s541_s1 + $0x60] sm:$0xff]  ;;  %s548_s9 = smov (!%p165_p4, %s424_s9), 1  ;;  %vm203_vm0 = vcmask 523264  }
   0xd   : > { %370 = vmatpush.msra.mxu2 %v201_v0  ;;  %378 = vmatpush.msra.mxu3 %v202_v1  ;;  %v200_v3 = vld [vmem:[%s541_s1 + $0x68] sm:$0xff]  ;;  %v197_v4 = vld [vmem:[%s541_s1 + $0x50] sm:$0xff]  ;;  %v198_v5 = vld [vmem:[%s541_s1 + $0x58] sm:$0xff]  ;;  %s368_s5 = sshll.u32 %s548_s9, 4  ;;  %s369_s25 = sshll.u32 %s548_s9, 5 }
   0xe   : > { %218 = vmatpush.msra.mxu0 %v201_v0  ;;  %241 = vmatpush.msra.mxu1 %v202_v1  ;;  %v195_v6 = vld [vmem:[%s541_s1 + $0x40] sm:$0xff]  ;;  %v196_v7 = vld [vmem:[%s541_s1 + $0x48] sm:$0xff]  ;;  %v193_v8 = vld [vmem:[%s541_s1 + $0x30] sm:$0xff]  ;;  %s172_s20 = scalar_lea.vmem %s540_s0, %s368_s5  ;;  %s183_s28 = scalar_lea.vmem %s542_s2, %s369_s25 }
   0xf   : > { %371 = vmatpush.msra.mxu2 %v199_v2  ;;  %379 = vmatpush.msra.mxu3 %v200_v3  ;;  %v194_v9 = vld [vmem:[%s541_s1 + $0x38] sm:$0xff]  ;;  %v191_v10 = vld [vmem:[%s541_s1 + $0x20] sm:$0xff]  ;;  %v192_v11 = vld [vmem:[%s541_s1 + $0x28] sm:$0xff] }
  0x10   : > { %219 = vmatpush.msra.mxu0 %v199_v2  ;;  %242 = vmatpush.msra.mxu1 %v200_v3  ;;  %v189_v12 = vld [vmem:[%s541_s1 + $0x10] sm:$0xff]  ;;  %v190_v13 = vld [vmem:[%s541_s1 + $0x18] sm:$0xff]  ;;  %v187_v14 = vld [vmem:[%s541_s1] sm:$0xff] }
  0x11   : > { %372 = vmatpush.msra.mxu2 %v197_v4  ;;  %380 = vmatpush.msra.mxu3 %v198_v5  ;;  %v188_v15 = vld [vmem:[%s541_s1 + $0x8] sm:$0xff]  ;;  %v185_v17 = vld [vmem:[%s172_s20] sm:$0xff] }
  0x12   : > { %220 = vmatpush.msra.mxu0 %v197_v4  ;;  %243 = vmatpush.msra.mxu1 %v198_v5  ;;  %v186_v16 = vld [vmem:[%s172_s20 + $0x8] sm:$0xff] }
  0x13   : > { %373 = vmatpush.msra.mxu2 %v195_v6  ;;  %381 = vmatpush.msra.mxu3 %v196_v7 }
  0x14   : > { %221 = vmatpush.msra.mxu0 %v195_v6  ;;  %244 = vmatpush.msra.mxu1 %v196_v7 }
  0x15   : > { %374 = vmatpush.msra.mxu2 %v193_v8  ;;  %382 = vmatpush.msra.mxu3 %v194_v9 }
  0x16   : > { %222 = vmatpush.msra.mxu0 %v193_v8  ;;  %245 = vmatpush.msra.mxu1 %v194_v9 }
  0x17   : > { %375 = vmatpush.msra.mxu2 %v191_v10  ;;  %383 = vmatpush.msra.mxu3 %v192_v11 }
  0x18   : > { %223 = vmatpush.msra.mxu0 %v191_v10  ;;  %246 = vmatpush.msra.mxu1 %v192_v11 }
  0x19   : > { %376 = vmatpush.msra.mxu2 %v189_v12  ;;  %384 = vmatpush.msra.mxu3 %v190_v13 }
  0x1a   : > { %224 = vmatpush.msra.mxu0 %v189_v12  ;;  %247 = vmatpush.msra.mxu1 %v190_v13 }
  0x1b   : > { %377 = vmatpush.msra.mxu2 %v187_v14  ;;  %385 = vmatpush.msra.mxu3 %v188_v15 }
  0x1c   : > { %363 = vmatmul.msk.f32.vlgmr.msra.gmra.mxu2 %vm203_vm0, %v186_v16  ;;  %365 = vmatmul.msk.f32.vlgmr.msra.gmra.mxu3 %vm203_vm0, %v186_v16 }
  0x1d   : > { %225 = vmatpush.msra.mxu0 %v187_v14  ;;  %248 = vmatpush.msra.mxu1 %v188_v15 }
  0x1e   : > { %362 = vmatmul.msk.f32.vlgmr.msra.gmra.mxu0 %vm203_vm0, %v185_v17  ;;  %364 = vmatmul.msk.f32.vlgmr.msra.gmra.mxu1 %vm203_vm0, %v185_v17 }
  0x9b   : > { %v227_v18 = vpop.f32.mrf.mxu0  ;;  %v250_v19 = vpop.f32.mrf.mxu1 }
  0x9c   : > { %256 = vst [vmem:[%s183_s28] sm:$0xff] %v227_v18 }
  0x9d   : > { %257 = vst.msk [vmem:[%s183_s28 + $0x8] sm:$0xff] %vm203_vm0, %v250_v19 }
  0x9f   : > { %v230_v20 = vpop.f32.mrf.mxu2  ;;  %v253_v21 = vpop.f32.mrf.mxu3 }
  0xa0   : > { %258 = vst [vmem:[%s183_s28 + $0x10] sm:$0xff] %v230_v20 }
  0xa1   : > { %259 = vst.msk [vmem:[%s183_s28 + $0x18] sm:$0xff] %vm203_vm0, %v253_v21 }
  0xa2 PF: > { %s12_s11 = sadd.s32 1, %s432_s11   ;;  %s543_s9 = smov %s428_s10 }
  0xa3   : > { %p9_p5 = scmp.ge.s32.totalorder %s12_s11, 4   ;;  %s544_s10 = smov %s546_s12 }
  0xa5   :  { %11 = sbr.rel (!%p9_p5) target bundleno = 2 (0x2), region = 58 }

// kernel: attention_pallas.3
= control target key start
LH: loop header
LB: loop body
LE: loop exit
PB: predicated region body
PF: predicated region fallthrough
CT: control target
= control target key end

     0   :  { %10 = vsyncpa [#allocation6], 0  ;;  %s3035_s0 = inlined_call_operand.vmem [shape: f32[2,8,16,8], index: 0, kind: input, shape index: {}]   ;;  %s3036_s1 = inlined_call_operand.vmem [shape: f32[2,8,16,8], index: 1, kind: input, shape index: {}]   ;;  %s3037_s2 = inlined_call_operand.vmem [shape: f32[2,8,16,8], index: 2, kind: input, shape index: {}]   ;;  %s3038_s3 = inlined_call_operand.vmem [shape: f32[8,8,64], index: 3, kind: input, shape index: {}]   ;;  %s3039_s4 = inlined_call_operand.vmem [shape: f32[1,64], index: 4, kind: input, shape index: {}]   ;;  %s3040_s5 = inlined_call_operand.hbm [shape: f32[2,16,64], index: 5, kind: output, shape index: {}]  }
   0x1   :  { %12 = vsyncpa [#allocation6 + $0x1], 0  ;;  %s2396_s18 = smov 0   ;;  %s2398_s19 = smov 0  }
   0x2   :  { %s2400_s20 = smov 0   ;;  %s2402_s21 = smov 0  }
   0x3   :  { %s2404_s22 = smov 0   ;;  %s2406_s23 = smov 0  }
   0x4 LB: > { %s2029_s24 = sadd.s32 4294967295, %s2359_s23   ;;  %s2030_s25 = sadd.s32 4294967294, %s2359_s23   ;;  %s2359_s23 = sphi %s2406_s23, %s18_s23   ;;  %s2355_s22 = sphi %s2404_s22, %s3047_s22   ;;  %s2351_s21 = sphi %s2402_s21, %s3046_s21   ;;  %s2347_s20 = sphi %s2400_s20, %s3045_s20   ;;  %s2343_s19 = sphi %s2398_s19, %s3044_s19   ;;  %s2339_s18 = sphi %s2396_s18, %s3043_s18  }
   0x5   : > { %s37_s26 = sadd.s32 1, %s2355_s22  ;;  %s172_s27 = sadd.s32 1, %s2347_s20 }
   0x6   : > { %p39_p0 = scmp.ge.s32.totalorder %s37_s26, 2  ;;  %p182_p1 = scmp.ne.s32.totalorder %s2347_s20, %s2343_s19 }
   0x7   : > { %p183_p2 = scmp.eq.s32.totalorder %s2029_s24, 1  ;;  %p188_p3 = scmp.ne.s32.totalorder %s2343_s19, %s2339_s18 }
   0x8   : > { %s3049_s26 = smov (%p39_p0, %s37_s26), 0  ;;  %p189_p5 = scmp.eq.s32.totalorder %s2030_s25, 1 }
   0x9   : > { %p2436_p4 = por %p183_p2, %p182_p1  ;;  %s167_s29 = ssub.s32 %s2355_s22, %s3049_s26 }
   0xa   : > { %p2033_p6 = scmp.ge.s32.totalorder %s2359_s23, 1  ;;  %p170_p7 = scmp.eq.s32.totalorder %s167_s29, 0 }
   0xb   : > { %p2443_p8 = por %p189_p5, %p188_p3  ;;  %p252_p9 = scmp.lt.s32.totalorder %s2359_s23, 3 }
   0xc   : > { %s2449_s6 = scalar_select %p170_p7, %s2347_s20, %s172_s27  }
   0xd   : > { %p253_p10 = pnand %p2033_p6, %p252_p9 }
   0xe   : > { %p303_p11 = scmp.lt.s32.totalorder (!%p253_p10), %s2351_s21, 1  ;;  %s299_s25 = sand.u32 (!%p253_p10), 1, %s2343_s19  }
   0xf   : > { %256 = sbr.rel (%p253_p10) target bundleno = 866 (0x362), region = 40  ;;  %s2034_s27 = sshll.u32 (!%p253_p10), %s299_s25, 4 }
  0x10   : > { %s2120_s9 = sshll.u32 (!%p253_p10), %s2351_s21, 4 }
  0x11   : > { %s1907_s12 = scalar_lea.hbm (!%p253_p10), %s3040_s5, %s2120_s9 }
  0x14   : > { %s304_s7 = scalar_select %p303_p11, %s2351_s21, 1  ;;  %vm370_vm0 = vcmask 64512   ;;  %vm732_vm1 = vcmask 130048   ;;  %vm337_vm2 = vcmask 7168   ;;  %v2361_v43 = vmov -inf  }
  0x15   : > { %340 = vst.msk [vmem:[#allocation2 + $0x10] sm:$0xff] %vm337_vm2, %v2361_v43  ;;  %vm1890_vm3 = vcmask 523264   ;;  %s1894_s21 = scalar_lea.sflag [#allocation6], %s299_s25 }
  0x16   : > { %s2453_s8 = sshll.u32 %s304_s7, 7  ;;  %338 = vst.msk [vmem:[#allocation2] sm:$0xff] %vm337_vm2, %v2361_v43 }
  0x17   : > { %s2459_s11 = scalar_lea.vmem %s3036_s1, %s2453_s8  ;;  %s2475_s14 = scalar_lea.vmem %s3035_s0, %s2453_s8  ;;  %339 = vst.msk [vmem:[#allocation2 + $0x8] sm:$0xff] %vm337_vm2, %v2361_v43 }
  0x18   : > { %v404_v0 = vld [vmem:[%s2459_s11 + $0x8] sm:$0xff]  ;;  %v406_v1 = vld [vmem:[%s2459_s11 + $0x18] sm:$0xff]  ;;  %v403_v4 = vld [vmem:[%s2459_s11] sm:$0xff]  ;;  %341 = vst.msk [vmem:[#allocation2 + $0x18] sm:$0xff] %vm337_vm2, %v2361_v43  ;;  %s2761_s17 = scalar_lea.vmem %s3037_s2, %s2453_s8  ;;  %s301_s8 = scalar_lea.vmem [#allocation5], %s2034_s27 }
  0x19   : > { %v408_v2 = vld [vmem:[%s2459_s11 + $0x28] sm:$0xff]  ;;  %2041 = vmatpush.xpose.msk.msra.mxu0 %vm370_vm0, %v404_v0  ;;  %2045 = vmatpush.xpose.msk.msra.mxu1 %vm370_vm0, %v406_v1  ;;  %v410_v3 = vld [vmem:[%s2459_s11 + $0x38] sm:$0xff]  ;;  %v405_v5 = vld [vmem:[%s2459_s11 + $0x10] sm:$0xff]  ;;  %342 = vst.msk [vmem:[#allocation2 + $0x20] sm:$0xff] %vm337_vm2, %v2361_v43  ;;  %v2362_v1 = vmov 0   ;;  %s1908_s13 = sshll.u32 %s301_s8, 4  ;;  %s1909_s13 = int_to_ptr.vmem [resolvable:$true] %s1908_s13 }
  0x1a   : > { %2049 = vmatpush.xpose.msk.msra.mxu2 %vm370_vm0, %v408_v2  ;;  %2053 = vmatpush.xpose.msk.msra.mxu3 %vm370_vm0, %v410_v3  ;;  %v407_v6 = vld [vmem:[%s2459_s11 + $0x20] sm:$0xff]  ;;  %v409_v7 = vld [vmem:[%s2459_s11 + $0x30] sm:$0xff]  ;;  %v414_v8 = vld [vmem:[%s2459_s11 + $0x58] sm:$0xff]  ;;  %343 = vst.msk [vmem:[#allocation2 + $0x28] sm:$0xff] %vm337_vm2, %v2361_v43  ;;  %v2363_v2 = vmov 0.0   ;;  %s2301_s27 = scalar_lea.hbm %s3040_s5, 32 }
  0x1b   : > { %v387_v9 = vld [vmem:[%s2475_s14] sm:$0xff]  ;;  %v389_v10 = vld [vmem:[%s2475_s14 + $0x10] sm:$0xff]  ;;  %v416_v13 = vld [vmem:[%s2459_s11 + $0x68] sm:$0xff]  ;;  %344 = vst.msk [vmem:[#allocation2 + $0x30] sm:$0xff] %vm337_vm2, %v2361_v43  ;;  %2182 = vset.pattern.permute.xlu2 %v2362_v1  ;;  %2181 = vset.pattern.permute.xlu1 %v2362_v1 }
  0x1c   : > { %v391_v11 = vld [vmem:[%s2475_s14 + $0x20] sm:$0xff]  ;;  %v393_v12 = vld [vmem:[%s2475_s14 + $0x30] sm:$0xff]  ;;  %v412_v14 = vld [vmem:[%s2459_s11 + $0x48] sm:$0xff]  ;;  %345 = vst.msk [vmem:[#allocation2 + $0x38] sm:$0xff] %vm337_vm2, %v2361_v43  ;;  %2183 = vset.pattern.permute.xlu0 %v2362_v1 }
  0x1d   : > { %2042 = vmatpush.xpose.msk.msra.mxu0 %vm370_vm0, %v403_v4  ;;  %2046 = vmatpush.xpose.msk.msra.mxu1 %vm370_vm0, %v405_v5  ;;  %v418_v15 = vld [vmem:[%s2459_s11 + $0x78] sm:$0xff]  ;;  %v413_v16 = vld [vmem:[%s2459_s11 + $0x50] sm:$0xff]  ;;  %v415_v17 = vld [vmem:[%s2459_s11 + $0x60] sm:$0xff]  ;;  %346 = vst.msk [vmem:[#allocation2 + $0x40] sm:$0xff] %vm337_vm2, %v2361_v43 }
  0x1e   : > { %2050 = vmatpush.xpose.msk.msra.mxu2 %vm370_vm0, %v407_v6  ;;  %2054 = vmatpush.xpose.msk.msra.mxu3 %vm370_vm0, %v409_v7  ;;  %v411_v18 = vld [vmem:[%s2459_s11 + $0x40] sm:$0xff]  ;;  %v417_v19 = vld [vmem:[%s2459_s11 + $0x70] sm:$0xff]  ;;  %v388_v20 = vld [vmem:[%s2475_s14 + $0x8] sm:$0xff]  ;;  %347 = vst.msk [vmem:[#allocation2 + $0x48] sm:$0xff] %vm337_vm2, %v2361_v43 }
  0x1f   : > { %v390_v21 = vld [vmem:[%s2475_s14 + $0x18] sm:$0xff]  ;;  %v392_v23 = vld [vmem:[%s2475_s14 + $0x28] sm:$0xff]  ;;  %v397_v24 = vld [vmem:[%s2475_s14 + $0x50] sm:$0xff]  ;;  %348 = vst.msk [vmem:[#allocation2 + $0x50] sm:$0xff] %vm337_vm2, %v2361_v43 }
  0x20   : > { %2043 = vmatmul.msk.f32.vlgmr.msra.gmra.mxu0 %vm370_vm0, %v387_v9  ;;  %2047 = vmatmul.msk.f32.vlgmr.msra.gmra.mxu1 %vm370_vm0, %v389_v10  ;;  %v394_v22 = vld [vmem:[%s2475_s14 + $0x38] sm:$0xff]  ;;  %v395_v25 = vld [vmem:[%s2475_s14 + $0x40] sm:$0xff]  ;;  %v401_v27 = vld [vmem:[%s2475_s14 + $0x70] sm:$0xff]  ;;  %349 = vst.msk [vmem:[#allocation2 + $0x58] sm:$0xff] %vm337_vm2, %v2361_v43 }
  0x21   : > { %2061 = vmatpush.xpose.msk.msrb.mxu1 %vm370_vm0, %v414_v8  ;;  %2051 = vmatmul.msk.f32.vlgmr.msra.gmra.mxu2 %vm370_vm0, %v391_v11  ;;  %v399_v26 = vld [vmem:[%s2475_s14 + $0x60] sm:$0xff]  ;;  %v396_v28 = vld [vmem:[%s2475_s14 + $0x48] sm:$0xff]  ;;  %v398_v29 = vld [vmem:[%s2475_s14 + $0x58] sm:$0xff]  ;;  %350 = vst.msk [vmem:[#allocation2 + $0x60] sm:$0xff] %vm337_vm2, %v2361_v43 }
  0x22   : > { %2065 = vmatpush.xpose.msk.msrb.mxu2 %vm370_vm0, %v416_v13  ;;  %2055 = vmatmul.msk.f32.vlgmr.msra.gmra.mxu3 %vm370_vm0, %v393_v12  ;;  %v402_v30 = vld [vmem:[%s2475_s14 + $0x78] sm:$0xff]  ;;  %v400_v31 = vld [vmem:[%s2475_s14 + $0x68] sm:$0xff]  ;;  %351 = vst.msk [vmem:[#allocation2 + $0x68] sm:$0xff] %vm337_vm2, %v2361_v43  ;;  %v718_v3 = vld [vmem:[#allocation2 + $0x10] sm:$0xff]  ;;  %s1910_s14 = sshll.u32 %s1907_s12, 4  ;;  %s1911_s14 = int_to_ptr.hbm [resolvable:$true] %s1910_s14 }
  0x23   : > { %2057 = vmatpush.xpose.msk.msrb.mxu0 %vm370_vm0, %v412_v14  ;;  %2069 = vmatpush.xpose.msk.msrb.mxu3 %vm370_vm0, %v418_v15  ;;  %352 = vst.msk [vmem:[#allocation2 + $0x70] sm:$0xff] %vm337_vm2, %v2361_v43  ;;  %v716_v4 = vld [vmem:[#allocation2] sm:$0xff]  ;;  %v2642_v11 = vld [vmem:[#allocation2 + $0x18] sm:$0xff]  ;;  %v2644_v12 = vld [vmem:[#allocation2 + $0x8] sm:$0xff]  ;;  %s2295_s15 = sshra.s32 %s1911_s14, 4  ;;  %s2296_s15 = int_to_ptr.hbm [resolvable:$true] %s2295_s15 }
  0x24   : > { %353 = vst.msk [vmem:[#allocation2 + $0x78] sm:$0xff] %vm337_vm2, %v2361_v43  ;;  %v720_v10 = vld [vmem:[#allocation2 + $0x20] sm:$0xff]  ;;  %s2297_s16 = scalar_lea.hbm %s2296_s15, 16  ;;  %p2302_p1 = scmp.lt.s32.totalorder %s2296_s15, %s3040_s5 }
  0x25   : > { %2062 = vmatpush.xpose.msk.msrb.mxu1 %vm370_vm0, %v413_v16  ;;  %373 = vst.msk [vmem:[#allocation4 + $0x10] sm:$0xff] %vm370_vm0, %v2363_v2  ;;  %p2298_p12 = scmp.ne.s32.totalorder %s2296_s15, %s2297_s16  ;;  %p2303_p2 = scmp.lt.s32.totalorder %s2301_s27, %s2297_s16 }
  0x26   : > { %2066 = vmatpush.xpose.msk.msrb.mxu2 %vm370_vm0, %v415_v17  ;;  %354 = vst.msk [vmem:[#allocation3] sm:$0xff] %vm337_vm2, %v2363_v2 }
  0x27   : > { %2058 = vmatpush.xpose.msk.msrb.mxu0 %vm370_vm0, %v411_v18  ;;  %2070 = vmatpush.xpose.msk.msrb.mxu3 %vm370_vm0, %v417_v19  ;;  %355 = vst.msk [vmem:[#allocation3 + $0x8] sm:$0xff] %vm337_vm2, %v2363_v2  ;;  %v2703_v1 = vld [vmem:[#allocation2 + $0x58] sm:$0xff]  ;;  %p2299_p13 = pnand %p2298_p12, %p2436_p4  ;;  %p2304_p3 = por %p2303_p2, %p2302_p1 }
  0x28   : > { %2044 = vmatmul.msk.f32.gmra.mxu0 %vm370_vm0, %v388_v20  ;;  %2048 = vmatmul.msk.f32.gmra.mxu1 %vm370_vm0, %v390_v21  ;;  %356 = vst.msk [vmem:[#allocation3 + $0x10] sm:$0xff] %vm337_vm2, %v2363_v2  ;;  %v722_v21 = vld [vmem:[#allocation2 + $0x30] sm:$0xff] }
  0x29   : > { %2052 = vmatmul.msk.f32.gmra.mxu2 %vm370_vm0, %v392_v23  ;;  %357 = vst.msk [vmem:[#allocation3 + $0x18] sm:$0xff] %vm337_vm2, %v2363_v2  ;;  %v2659_v23 = vld [vmem:[#allocation2 + $0x28] sm:$0xff]  ;;  %p2300_p0 = pneg %p2299_p13 }
  0x2a   : > { %2056 = vmatmul.msk.f32.gmra.mxu3 %vm370_vm0, %v394_v22  ;;  %358 = vst.msk [vmem:[#allocation3 + $0x20] sm:$0xff] %vm337_vm2, %v2363_v2  ;;  %v2657_v22 = vld [vmem:[#allocation2 + $0x38] sm:$0xff] }
  0x2b   : > { %359 = vst.msk [vmem:[#allocation3 + $0x28] sm:$0xff] %vm337_vm2, %v2363_v2  ;;  %p2305_p5 = pnand %p2304_p3, %p2300_p0 }
  0x2c   : > { %360 = vst.msk [vmem:[#allocation3 + $0x30] sm:$0xff] %vm337_vm2, %v2363_v2 }
  0x2d   : > { %361 = vst.msk [vmem:[#allocation3 + $0x38] sm:$0xff] %vm337_vm2, %v2363_v2 }
  0x2e   : > { %362 = vst.msk [vmem:[#allocation3 + $0x40] sm:$0xff] %vm337_vm2, %v2363_v2 }
  0x2f   : > { %363 = vst.msk [vmem:[#allocation3 + $0x48] sm:$0xff] %vm337_vm2, %v2363_v2 }
  0x30   : > { %2063 = vmatmul.msk.f32.vlgmr.msrb.gmra.mxu1 %vm370_vm0, %v397_v24  ;;  %2059 = vmatmul.msk.f32.vlgmr.msrb.gmra.mxu0 %vm370_vm0, %v395_v25  ;;  %364 = vst.msk [vmem:[#allocation3 + $0x50] sm:$0xff] %vm337_vm2, %v2363_v2 }
  0x31   : > { %2067 = vmatmul.msk.f32.vlgmr.msrb.gmra.mxu2 %vm370_vm0, %v399_v26  ;;  %365 = vst.msk [vmem:[#allocation3 + $0x58] sm:$0xff] %vm337_vm2, %v2363_v2 }
  0x32   : > { %2071 = vmatmul.msk.f32.vlgmr.msrb.gmra.mxu3 %vm370_vm0, %v401_v27  ;;  %366 = vst.msk [vmem:[#allocation3 + $0x60] sm:$0xff] %vm337_vm2, %v2363_v2 }
  0x33   : > { %367 = vst.msk [vmem:[#allocation3 + $0x68] sm:$0xff] %vm337_vm2, %v2363_v2 }
  0x34   : > { %368 = vst.msk [vmem:[#allocation3 + $0x70] sm:$0xff] %vm337_vm2, %v2363_v2 }
  0x35   : > { %369 = vst.msk [vmem:[#allocation3 + $0x78] sm:$0xff] %vm337_vm2, %v2363_v2 }
  0x36   : > { %371 = vst.msk [vmem:[#allocation4] sm:$0xff] %vm370_vm0, %v2363_v2 }
  0x37   : > { %372 = vst.msk [vmem:[#allocation4 + $0x8] sm:$0xff] %vm370_vm0, %v2363_v2 }
  0x38   : > { %2060 = vmatmul.msk.f32.gmra.mxu0 %vm370_vm0, %v396_v28  ;;  %2064 = vmatmul.msk.f32.gmra.mxu1 %vm370_vm0, %v398_v29  ;;  %374 = vst.msk [vmem:[#allocation4 + $0x18] sm:$0xff] %vm370_vm0, %v2363_v2 }
  0x39   : > { %2068 = vmatmul.msk.f32.gmra.mxu2 %vm370_vm0, %v400_v31  ;;  %375 = vst.msk [vmem:[#allocation4 + $0x20] sm:$0xff] %vm370_vm0, %v2363_v2 }
  0x3a   : > { %2072 = vmatmul.msk.f32.gmra.mxu3 %vm370_vm0, %v402_v30  ;;  %376 = vst.msk [vmem:[#allocation4 + $0x28] sm:$0xff] %vm370_vm0, %v2363_v2 }
  0x3b   : > { %377 = vst.msk [vmem:[#allocation4 + $0x30] sm:$0xff] %vm370_vm0, %v2363_v2 }
  0x3c   : > { %378 = vst.msk [vmem:[#allocation4 + $0x38] sm:$0xff] %vm370_vm0, %v2363_v2 }
  0x3d   : > { %379 = vst.msk [vmem:[#allocation4 + $0x40] sm:$0xff] %vm370_vm0, %v2363_v2 }
  0x3e   : > { %380 = vst.msk [vmem:[#allocation4 + $0x48] sm:$0xff] %vm370_vm0, %v2363_v2 }
  0x3f   : > { %381 = vst.msk [vmem:[#allocation4 + $0x50] sm:$0xff] %vm370_vm0, %v2363_v2 }
  0x40   : > { %382 = vst.msk [vmem:[#allocation4 + $0x58] sm:$0xff] %vm370_vm0, %v2363_v2 }
  0x41   : > { %383 = vst.msk [vmem:[#allocation4 + $0x60] sm:$0xff] %vm370_vm0, %v2363_v2 }
  0x42   : > { %384 = vst.msk [vmem:[#allocation4 + $0x68] sm:$0xff] %vm370_vm0, %v2363_v2 }
  0x43   : > { %385 = vst.msk [vmem:[#allocation4 + $0x70] sm:$0xff] %vm370_vm0, %v2363_v2 }
  0x44   : > { %386 = vst.msk [vmem:[#allocation4 + $0x78] sm:$0xff] %vm370_vm0, %v2363_v2 }
  0x9d   : > { %v2531_v32 = vpop.f32.mrf.mxu0  ;;  %v2533_v33 = vpop.f32.mrf.mxu1 }
  0x9e   : > { %v739_v34 = vsel %vm732_vm1, %v2533_v33, -inf  ;;  %v733_v35 = vsel %vm732_vm1, %v2531_v32, -inf }
  0x9f   : > { %740 = vmax.xlane.f32.xlu1 %v739_v34  ;;  %734 = vmax.xlane.f32.xlu0 %v733_v35 }
  0xa4   : > { %v2539_v36 = vpop.f32.mrf.mxu2 }
  0xa5   : > { %v2541_v37 = vpop.f32.mrf.mxu3  ;;  %v745_v38 = vsel %vm732_vm1, %v2539_v36, -inf  ;;  %v2545_v39 = vpop.f32.mrf.mxu0 }
  0xa6   : > { %v2547_v40 = vpop.f32.mrf.mxu1  ;;  %746 = vmax.xlane.f32.xlu2 %v745_v38  ;;  %v736_v42 = vsel %vm732_vm1, %v2545_v39, -inf  ;;  %v751_v46 = vsel %vm732_vm1, %v2541_v37, -inf  ;;  %v2676_v38 = vld [vmem:[#allocation2 + $0x40] sm:$0xff] }
  0xa7   : > { %v742_v41 = vsel %vm732_vm1, %v2547_v40, -inf  ;;  %737 = vmax.xlane.f32.xlu0 %v736_v42  ;;  %v2680_v42 = vld [vmem:[#allocation2 + $0x48] sm:$0xff] }
  0xa8   : > { %743 = vmax.xlane.f32.xlu1 %v742_v41  ;;  %v2678_v41 = vld [vmem:[#allocation2 + $0x50] sm:$0xff] }
  0xac   : > { %v2559_v45 = vpop.f32.mrf.mxu2 }
  0xad   : > { %v2557_v44 = vpop.f32.mrf.mxu3  ;;  %v748_v48 = vsel %vm732_vm1, %v2559_v45, -inf  ;;  %v2568_v49 = vpop.f32.mrf.mxu0 }
  0xae   : > { %v754_v47 = vsel %vm732_vm1, %v2557_v44, -inf  ;;  %752 = vmax.xlane.f32.xlu2 %v751_v46  ;;  %v2574_v50 = vpop.f32.mrf.mxu1  ;;  %v757_v51 = vsel %vm732_vm1, %v2568_v49, -inf }
  0xaf   : > { %749 = vmax.xlane.f32.xlu0 %v748_v48  ;;  %v763_v52 = vsel %vm732_vm1, %v2574_v50, -inf }
  0xb0   : > { %755 = vmax.xlane.f32.xlu1 %v754_v47 }
  0xb4   : > { %v2593_v56 = vpop.f32.mrf.mxu2 }
  0xb5   : > { %v2584_v53 = vpop.f32.mrf.mxu0  ;;  %v2587_v54 = vpop.f32.mrf.mxu3  ;;  %v769_v59 = vsel %vm732_vm1, %v2593_v56, -inf }
  0xb6   : > { %758 = vmax.xlane.f32.xlu2 %v757_v51  ;;  %v760_v55 = vsel %vm732_vm1, %v2584_v53, -inf  ;;  %v2595_v57 = vpop.f32.mrf.mxu1  ;;  %v775_v58 = vsel %vm732_vm1, %v2587_v54, -inf }
  0xb7   : > { %761 = vmax.xlane.f32.xlu0 %v760_v55  ;;  %v766_v60 = vsel %vm732_vm1, %v2595_v57, -inf }
  0xb8   : > { %764 = vmax.xlane.f32.xlu1 %v763_v52 }
  0xbc   : > { %v2605_v62 = vpop.f32.mrf.mxu2 }
  0xbd   : > { %v2603_v61 = vpop.f32.mrf.mxu3  ;;  %v772_v0 = vsel %vm732_vm1, %v2605_v62, -inf }
  0xbe   : > { %776 = vmax.xlane.f32.xlu2 %v775_v58  ;;  %v778_v63 = vsel %vm732_vm1, %v2603_v61, -inf }
  0xbf   : > { %767 = vmax.xlane.f32.xlu0 %v766_v60 }
  0xc0   : > { %770 = vmax.xlane.f32.xlu1 %v769_v59 }
  0xc6   : > { %779 = vmax.xlane.f32.xlu2 %v778_v63  ;;  %v730_v63 = vld [vmem:[#allocation2 + $0x70] sm:$0xff] }
  0xc7   : > { %773 = vmax.xlane.f32.xlu0 %v772_v0  ;;  %v728_v0 = vld [vmem:[#allocation2 + $0x60] sm:$0xff] }
 0x112   : > { %v741_v5 = vpop.xlane.xlu1 %740  ;;  %v735_v6 = vpop.xlane.xlu0 %734 }
 0x113   : > { %v783_v7 = vmax.f32 %v718_v3, %v741_v5  ;;  %v781_v8 = vmax.f32 %v716_v4, %v735_v6 }
 0x115   : > { %1464 = vst.msk [vmem:[#allocation2 + $0x10] sm:$0xff] %vm337_vm2, %v783_v7  ;;  %847 = vperm.xlu1 %2181, %v781_v8   ;;  %857 = vperm.xlu2 %2182, %v783_v7   ;;  %v797_v9 = vsub.f32 %v716_v4, %v781_v8  ;;  %v799_v20 = vsub.f32 %v718_v3, %v783_v7 }
 0x116   : > { %1462 = vst.msk [vmem:[#allocation2] sm:$0xff] %vm337_vm2, %v781_v8 }
 0x117   : > { %v813_v14 = vmul.f32 1.442695, %v797_v9  ;;  %v817_v25 = vmul.f32 1.442695, %v799_v20 }
 0x119   : > { %v747_v13 = vpop.xlane.xlu2 %746  ;;  %2185 = vpow2.f32 %v813_v14  ;;  %v729_v14 = vld [vmem:[#allocation2 + $0x68] sm:$0xff] }
 0x11a   : > { %v785_v15 = vmax.f32 %v720_v10, %v747_v13  ;;  %v738_v17 = vpop.xlane.xlu0 %737  ;;  %2187 = vpow2.f32 %v817_v25  ;;  %v2721_v13 = vld [vmem:[#allocation2 + $0x78] sm:$0xff] }
 0x11b   : > { %v744_v16 = vpop.xlane.xlu1 %743  ;;  %v782_v19 = vmax.f32 %v2644_v12, %v738_v17 }
 0x11c   : > { %v2650_v18 = vmax.f32 %v2642_v11, %v744_v16  ;;  %1466 = vst.msk [vmem:[#allocation2 + $0x20] sm:$0xff] %vm337_vm2, %v785_v15  ;;  %v801_v34 = vsub.f32 %v720_v10, %v785_v15 }
 0x11d   : > { %852 = vperm.xlu1 %2181, %v782_v19   ;;  %867 = vperm.xlu2 %2182, %v785_v15   ;;  %1463 = vst.msk [vmem:[#allocation2 + $0x8] sm:$0xff] %vm337_vm2, %v782_v19  ;;  %v798_v60 = vsub.f32 %v2644_v12, %v782_v19 }
 0x11e   : > { %1465 = vst.msk [vmem:[#allocation2 + $0x18] sm:$0xff] %vm337_vm2, %v2650_v18  ;;  %v821_v46 = vmul.f32 1.442695, %v801_v34  ;;  %v800_v12 = vsub.f32 %v2642_v11, %v2650_v18 }
 0x11f   : > { %v2667_v31 = vpop.eup %2185  ;;  %v815_v6 = vmul.f32 1.442695, %v798_v60 }
 0x120   : > { %v2691_v59 = vpop.eup %2187  ;;  %2189 = vpow2.f32 %v821_v46  ;;  %v819_v16 = vmul.f32 1.442695, %v800_v12 }
 0x121   : > { %v753_v24 = vpop.xlane.xlu2 %752 }
 0x122   : > { %v787_v26 = vmax.f32 %v722_v21, %v753_v24  ;;  %v750_v28 = vpop.xlane.xlu0 %749 }
 0x123   : > { %v756_v27 = vpop.xlane.xlu1 %755  ;;  %v2665_v30 = vmax.f32 %v2659_v23, %v750_v28 }
 0x124   : > { %v2662_v29 = vmax.f32 %v2657_v22, %v756_v27  ;;  %1468 = vst.msk [vmem:[#allocation2 + $0x30] sm:$0xff] %vm337_vm2, %v787_v26  ;;  %877 = vperm.xlu0 %2183, %v787_v26   ;;  %v803_v35 = vsub.f32 %v722_v21, %v787_v26 }
 0x125   : > { %1104 = vperm.xlu1 %2181, %v2667_v31   ;;  %862 = vperm.xlu2 %2182, %v2650_v18   ;;  %1467 = vst.msk [vmem:[#allocation2 + $0x28] sm:$0xff] %vm337_vm2, %v2665_v30  ;;  %v802_v26 = vsub.f32 %v2659_v23, %v2665_v30 }
 0x126   : > { %1469 = vst.msk [vmem:[#allocation2 + $0x38] sm:$0xff] %vm337_vm2, %v2662_v29  ;;  %v825_v52 = vmul.f32 1.442695, %v803_v35  ;;  %v2708_v9 = vpop.eup %2189  ;;  %v804_v18 = vsub.f32 %v2657_v22, %v2662_v29 }
 0x127   : > { %v823_v28 = vmul.f32 1.442695, %v802_v26  ;;  %v425_v26 = vld [vmem:[%s2761_s17 + $0x30] sm:$0xff] }
 0x128   : > { %2191 = vpow2.f32 %v825_v52  ;;  %v827_v21 = vmul.f32 1.442695, %v804_v18 }
 0x129   : > { %v759_v43 = vpop.xlane.xlu2 %758  ;;  %2193 = vpow2.f32 %v815_v6 }
 0x12a   : > { %v2683_v48 = vmax.f32 %v2676_v38, %v759_v43  ;;  %v762_v51 = vpop.xlane.xlu0 %761  ;;  %2195 = vpow2.f32 %v819_v16  ;;  %v419_v16 = vld [vmem:[%s2761_s17] sm:$0xff] }
 0x12b   : > { %v765_v47 = vpop.xlane.xlu1 %764  ;;  %v2689_v58 = vmax.f32 %v2680_v42, %v762_v51  ;;  %2197 = vpow2.f32 %v827_v21  ;;  %v422_v51 = vld [vmem:[%s2761_s17 + $0x18] sm:$0xff] }
 0x12c   : > { %v2686_v55 = vmax.f32 %v2678_v41, %v765_v47  ;;  %1470 = vst.msk [vmem:[#allocation2 + $0x40] sm:$0xff] %vm337_vm2, %v2683_v48  ;;  %v805_v23 = vsub.f32 %v2676_v38, %v2683_v48  ;;  %1247 = vmatpush.msra.mxu1 %v422_v51  ;;  %v426_v21 = vld [vmem:[%s2761_s17 + $0x38] sm:$0xff] }
 0x12d   : > { %872 = vperm.xlu1 %2181, %v2665_v30   ;;  %1114 = vperm.xlu2 %2182, %v2691_v59   ;;  %1471 = vst.msk [vmem:[#allocation2 + $0x48] sm:$0xff] %vm337_vm2, %v2689_v58 }
 0x12e   : > { %1472 = vst.msk [vmem:[#allocation2 + $0x50] sm:$0xff] %vm337_vm2, %v2686_v55  ;;  %897 = vperm.xlu0 %2183, %v2686_v55   ;;  %v2711_v10 = vpop.eup %2191  ;;  %v807_v22 = vsub.f32 %v2678_v41, %v2686_v55  ;;  %v829_v43 = vmul.f32 1.442695, %v805_v23  ;;  %v806_v41 = vsub.f32 %v2680_v42, %v2689_v58  ;;  %v421_v55 = vld [vmem:[%s2761_s17 + $0x10] sm:$0xff]  ;;  %1305 = vmatpush.msra.mxu3 %v426_v21 }
 0x12f   : > { %v2728_v11 = vpop.eup %2193  ;;  %1248 = vmatpush.msra.mxu1 %v421_v55 }
 0x130   : > { %v2735_v24 = vpop.eup %2195  ;;  %v833_v30 = vmul.f32 1.442695, %v807_v22  ;;  %v831_v42 = vmul.f32 1.442695, %v806_v41  ;;  %1306 = vmatpush.msra.mxu3 %v425_v26  ;;  %v429_v41 = vld [vmem:[%s2761_s17 + $0x50] sm:$0xff] }
 0x131   : > { %v777_v2 = vpop.xlane.xlu2 %776  ;;  %v2741_v34 = vpop.eup %2197 }
 0x132   : > { %v795_v4 = vmax.f32 %v730_v63, %v777_v2  ;;  %v768_v5 = vpop.xlane.xlu0 %767  ;;  %v424_v2 = vld [vmem:[%s2761_s17 + $0x28] sm:$0xff] }
 0x133   : > { %v771_v3 = vpop.xlane.xlu1 %770  ;;  %v2706_v8 = vmax.f32 %v2703_v1, %v768_v5  ;;  %1276 = vmatpush.msra.mxu2 %v424_v2 }
 0x134   : > { %v793_v7 = vmax.f32 %v728_v0, %v771_v3  ;;  %1476 = vst.msk [vmem:[#allocation2 + $0x70] sm:$0xff] %vm337_vm2, %v795_v4 }
 0x135   : > { %1124 = vperm.xlu1 %2181, %v2708_v9   ;;  %882 = vperm.xlu2 %2182, %v2662_v29   ;;  %1473 = vst.msk [vmem:[#allocation2 + $0x58] sm:$0xff] %vm337_vm2, %v2706_v8  ;;  %v811_v29 = vsub.f32 %v730_v63, %v795_v4  ;;  %v808_v38 = vsub.f32 %v2703_v1, %v2706_v8 }
 0x136   : > { %1474 = vst.msk [vmem:[#allocation2 + $0x60] sm:$0xff] %vm337_vm2, %v793_v7  ;;  %1134 = vperm.xlu0 %2183, %v2711_v10   ;;  %v809_v25 = vsub.f32 %v728_v0, %v793_v7 }
 0x137   : > { %v841_v35 = vmul.f32 1.442695, %v811_v29  ;;  %v835_v52 = vmul.f32 1.442695, %v808_v38  ;;  %v427_v29 = vld [vmem:[%s2761_s17 + $0x40] sm:$0xff] }
 0x138   : > { %v837_v27 = vmul.f32 1.442695, %v809_v25 }
 0x139   : > { %v780_v15 = vpop.xlane.xlu2 %779 }
 0x13a   : > { %v2724_v17 = vmax.f32 %v2721_v13, %v780_v15  ;;  %v774_v19 = vpop.xlane.xlu0 %773  ;;  %2199 = vpow2.f32 %v837_v27  ;;  %v428_v27 = vld [vmem:[%s2761_s17 + $0x48] sm:$0xff] }
 0x13b   : > { %v794_v20 = vmax.f32 %v729_v14, %v774_v19  ;;  %2201 = vpow2.f32 %v823_v28 }
 0x13c   : > { %1477 = vst.msk [vmem:[#allocation2 + $0x78] sm:$0xff] %vm337_vm2, %v2724_v17  ;;  %2203 = vpow2.f32 %v833_v30  ;;  %v812_v1 = vsub.f32 %v2721_v13, %v2724_v17 }
 0x13d   : > { %907 = vperm.xlu1 %2181, %v793_v7   ;;  %887 = vperm.xlu2 %2182, %v2683_v48   ;;  %1475 = vst.msk [vmem:[#allocation2 + $0x68] sm:$0xff] %vm337_vm2, %v794_v20  ;;  %2205 = vpow2.f32 %v841_v35  ;;  %v810_v48 = vsub.f32 %v729_v14, %v794_v20  ;;  %v420_v14 = vld [vmem:[%s2761_s17 + $0x8] sm:$0xff]  ;;  %v430_v35 = vld [vmem:[%s2761_s17 + $0x58] sm:$0xff] }
 0x13e   : > { %1109 = vperm.xlu0 %2183, %v2728_v11   ;;  %2207 = vpow2.f32 %v829_v43  ;;  %v843_v3 = vmul.f32 1.442695, %v812_v1  ;;  %1218 = vmatpush.msra.mxu0 %v420_v14 }
 0x13f   : > { %v839_v60 = vmul.f32 1.442695, %v810_v48  ;;  %2209 = vpow2.f32 %v831_v42  ;;  %1363 = vmatpush.msrb.mxu1 %v430_v35 }
 0x140   : > { %v2750_v46 = vpop.eup %2199  ;;  %2211 = vpow2.f32 %v835_v52  ;;  %1219 = vmatpush.msra.mxu0 %v419_v16  ;;  %v431_v16 = vld [vmem:[%s2761_s17 + $0x60] sm:$0xff] }
 0x141   : > { %v2752_v47 = vpop.eup %2201  ;;  %2213 = vpow2.f32 %v839_v60  ;;  %1364 = vmatpush.msrb.mxu1 %v429_v41 }
 0x142   : > { %2215 = vpow2.f32 %v843_v3  ;;  %1334 = vmatpush.msrb.mxu0 %v428_v27 }
 0x144   : > { %1335 = vmatpush.msrb.mxu0 %v427_v29 }
 0x145   : > { %1119 = vperm.xlu2 %2182, %v2735_v24   ;;  %892 = vperm.xlu1 %2181, %v2689_v58   ;;  %v2768_v58 = vpop.eup %2203 }
 0x146   : > { %917 = vperm.xlu0 %2183, %v795_v4   ;;  %v2770_v63 = vpop.eup %2205  ;;  %v423_v4 = vld [vmem:[%s2761_s17 + $0x20] sm:$0xff] }
 0x147   : > { %v2772_v0 = vpop.eup %2207  ;;  %1277 = vmatpush.msra.mxu2 %v423_v4 }
 0x148   : > { %v2781_v5 = vpop.eup %2209 }
 0x149   : > { %v2783_v6 = vpop.eup %2211 }
 0x14a   : > { %v2785_v7 = vpop.eup %2213 }
 0x14d   : > { %922 = vperm.xlu2 %2182, %v2724_v17   ;;  %1139 = vperm.xlu1 %2181, %v2741_v34  }
 0x14e   : > { %902 = vperm.xlu0 %2183, %v2706_v8   ;;  %v2790_v8 = vpop.eup %2215 }
 0x155   : > { %1164 = vperm.xlu2 %2182, %v2750_v46   ;;  %912 = vperm.xlu1 %2181, %v794_v20  }
 0x156   : > { %1129 = vperm.xlu0 %2183, %v2752_v47  }
 0x15d   : > { %1174 = vperm.xlu2 %2182, %v2770_v63   ;;  %1154 = vperm.xlu1 %2181, %v2768_v58  }
 0x15e   : > { %1144 = vperm.xlu0 %2183, %v2772_v0  }
 0x165   : > { %1159 = vperm.xlu2 %2182, %v2783_v6   ;;  %1149 = vperm.xlu1 %2181, %v2781_v5  }
 0x166   : > { %1169 = vperm.xlu0 %2183, %v2785_v7  }
 0x16e   : > { %1179 = vperm.xlu0 %2183, %v2790_v8  }
 0x16f   : > { %v858_v12 = vpop.permute.xlu2 %857 }
 0x170   : > { %v927_v13 = vsub.f32 %v2533_v33, %v858_v12  ;;  %v432_v12 = vld [vmem:[%s2761_s17 + $0x68] sm:$0xff] }
 0x171   : > { %1392 = vmatpush.msrb.mxu2 %v432_v12 }
 0x172   : > { %v945_v15 = vmul.f32 1.442695, %v927_v13 }
 0x173   : > { %1393 = vmatpush.msrb.mxu2 %v431_v16 }
 0x174   : > { %2217 = vpow2.f32 %v945_v15 }
 0x177   : > { %v868_v17 = vpop.permute.xlu2 %867 }
 0x178   : > { %v929_v19 = vsub.f32 %v2539_v36, %v868_v17 }
 0x17a   : > { %v2218_v20 = vpop.eup %2217  ;;  %v949_v18 = vmul.f32 1.442695, %v929_v19 }
 0x17b   : > { %2075 = vmatmul.msk.f32.vlgmr.msra.gmra.mxu1 %vm732_vm1, %v2218_v20  ;;  %v1011_v38 = vsel %vm732_vm1, %v2218_v20, 0.0 }
 0x17c   : > { %2219 = vpow2.f32 %v949_v18  ;;  %v434_v18 = vld [vmem:[%s2761_s17 + $0x78] sm:$0xff] }
 0x17d   : > { %1421 = vmatpush.msrb.mxu3 %v434_v18 }
 0x17f   : > { %v863_v33 = vpop.permute.xlu2 %862 }
 0x180   : > { %v928_v25 = vsub.f32 %v2547_v40, %v863_v33 }
 0x182   : > { %v2220_v28 = vpop.eup %2219  ;;  %v947_v22 = vmul.f32 1.442695, %v928_v25 }
 0x183   : > { %2077 = vmatmul.msk.f32.vlgmr.msra.gmra.mxu2 %vm732_vm1, %v2220_v28  ;;  %v1017_v17 = vsel %vm732_vm1, %v2220_v28, 0.0  ;;  %v433_v28 = vld [vmem:[%s2761_s17 + $0x70] sm:$0xff] }
 0x184   : > { %2221 = vpow2.f32 %v947_v22  ;;  %1422 = vmatpush.msrb.mxu3 %v433_v28 }
 0x187   : > { %v848_v36 = vpop.permute.xlu1 %847  ;;  %v2804_v23 = vpop.permute.xlu2 %1114 }
 0x188   : > { %v925_v30 = vsub.f32 %v2531_v32, %v848_v36 }
 0x18a   : > { %v2222_v40 = vpop.eup %2221  ;;  %v941_v43 = vmul.f32 1.442695, %v925_v30 }
 0x18b   : > { %2076 = vmatmul.msk.f32.gmra.mxu1 %vm732_vm1, %v2222_v40 }
 0x18c   : > { %2223 = vpow2.f32 %v941_v43 }
 0x18f   : > { %v853_v48 = vpop.permute.xlu1 %852  ;;  %v883_v51 = vpop.permute.xlu2 %882  ;;  %1012 = vadd.xlane.f32.xlu1 %v1011_v38 }
 0x190   : > { %v926_v42 = vsub.f32 %v2545_v39, %v853_v48  ;;  %v932_v39 = vsub.f32 %v2557_v44, %v883_v51 }
 0x192   : > { %v2224_v52 = vpop.eup %2223  ;;  %v943_v55 = vmul.f32 1.442695, %v926_v42 }
 0x193   : > { %2073 = vmatmul.msk.f32.vlgmr.msra.gmra.mxu0 %vm732_vm1, %v2224_v52  ;;  %v1005_v32 = vsel %vm732_vm1, %v2224_v52, 0.0 }
 0x194   : > { %2225 = vpow2.f32 %v943_v55  ;;  %1006 = vadd.xlane.f32.xlu2 %v1005_v32 }
 0x196   : > { %v878_v60 = vpop.permute.xlu0 %877 }
 0x197   : > { %v931_v1 = vsub.f32 %v2541_v37, %v878_v60  ;;  %v2815_v2 = vpop.permute.xlu1 %1104  ;;  %v888_v3 = vpop.permute.xlu2 %887 }
 0x198   : > { %v933_v4 = vsub.f32 %v2568_v49, %v888_v3  ;;  %v955_v49 = vmul.f32 1.442695, %v932_v39 }
 0x199   : > { %v953_v13 = vmul.f32 1.442695, %v931_v1 }
 0x19a   : > { %v2226_v14 = vpop.eup %2225  ;;  %v957_v15 = vmul.f32 1.442695, %v933_v4 }
 0x19b   : > { %2227 = vpow2.f32 %v953_v13  ;;  %2074 = vmatmul.msk.f32.gmra.mxu0 %vm732_vm1, %v2226_v14  ;;  %v1008_v37 = vsel %vm732_vm1, %v2226_v14, 0.0 }
 0x19c   : > { %2229 = vpow2.f32 %v957_v15  ;;  %1018 = vadd.xlane.f32.xlu2 %v1017_v17  ;;  %1009 = vadd.xlane.f32.xlu1 %v1008_v37 }
 0x19d   : > { %2231 = vpow2.f32 %v955_v49 }
 0x19f   : > { %v873_v44 = vpop.permute.xlu1 %872  ;;  %v2832_v29 = vpop.permute.xlu2 %1119 }
 0x1a0   : > { %v930_v19 = vsub.f32 %v2559_v45, %v873_v44  ;;  %v898_v20 = vpop.permute.xlu0 %897  ;;  %v1014_v45 = vsel %vm732_vm1, %v2222_v40, 0.0 }
 0x1a1   : > { %v2228_v21 = vpop.eup %2227  ;;  %v935_v33 = vsub.f32 %v2574_v50, %v898_v20 }
 0x1a2   : > { %v2230_v25 = vpop.eup %2229  ;;  %v951_v26 = vmul.f32 1.442695, %v930_v19  ;;  %2079 = vmatmul.msk.f32.vlgmr.msra.gmra.mxu3 %vm732_vm1, %v2228_v21  ;;  %v1023_v27 = vsel %vm732_vm1, %v2228_v21, 0.0 }
 0x1a3   : > { %v961_v22 = vmul.f32 1.442695, %v935_v33  ;;  %1024 = vadd.xlane.f32.xlu0 %v1023_v27  ;;  %2081 = vmatmul.msk.f32.vlgmr.msrb.gmra.mxu0 %vm732_vm1, %v2230_v25  ;;  %v2232_v50 = vpop.eup %2231  ;;  %v1029_v60 = vsel %vm732_vm1, %v2230_v25, 0.0 }
 0x1a4   : > { %2233 = vpow2.f32 %v951_v26  ;;  %1015 = vadd.xlane.f32.xlu2 %v1014_v45  ;;  %v1026_v43 = vsel %vm732_vm1, %v2232_v50, 0.0  ;;  %v1088_v45 = vld [vmem:[#allocation4 + $0x10] sm:$0xff] }
 0x1a5   : > { %2235 = vpow2.f32 %v961_v22 }
 0x1a7   : > { %v2834_v36 = vpop.permute.xlu1 %1124  ;;  %v923_v48 = vpop.permute.xlu2 %922 }
 0x1a8   : > { %v2836_v30 = vpop.permute.xlu0 %1134  ;;  %v940_v55 = vsub.f32 %v2603_v61, %v923_v48  ;;  %v975_v48 = vld [vmem:[#allocation3 + $0x10] sm:$0xff] }
 0x1aa   : > { %v2234_v35 = vpop.eup %2233  ;;  %2080 = vmatmul.msk.f32.gmra.mxu3 %vm732_vm1, %v2232_v50  ;;  %v971_v1 = vmul.f32 1.442695, %v940_v55  ;;  %v1090_v55 = vld [vmem:[#allocation4 + $0x20] sm:$0xff] }
 0x1ab   : > { %v2236_v41 = vpop.eup %2235  ;;  %1027 = vadd.xlane.f32.xlu0 %v1026_v43  ;;  %2078 = vmatmul.msk.f32.gmra.mxu2 %vm732_vm1, %v2234_v35  ;;  %v1020_v40 = vsel %vm732_vm1, %v2234_v35, 0.0  ;;  %v1184_v35 = vmul.f32 %v2804_v23, %v1088_v45  ;;  %v1186_v23 = vmul.f32 %v2834_v36, %v1090_v55  ;;  %v974_v36 = vld [vmem:[#allocation3 + $0x8] sm:$0xff] }
 0x1ac   : > { %2083 = vmatmul.msk.f32.vlgmr.msrb.gmra.mxu1 %vm732_vm1, %v2236_v41  ;;  %1021 = vadd.xlane.f32.xlu1 %v1020_v40  ;;  %v1035_v38 = vsel %vm732_vm1, %v2236_v41, 0.0  ;;  %v1087_v45 = vld [vmem:[#allocation4 + $0x8] sm:$0xff] }
 0x1ad   : > { %1036 = vadd.xlane.f32.xlu2 %v1035_v38 }
 0x1af   : > { %v908_v51 = vpop.permute.xlu1 %907 }
 0x1b0   : > { %v937_v42 = vsub.f32 %v2593_v56, %v908_v51  ;;  %v2845_v52 = vpop.permute.xlu0 %1109 }
 0x1b2   : > { %v965_v32 = vmul.f32 1.442695, %v937_v42  ;;  %v991_v42 = vmul.f32 %v2691_v59, %v975_v48 }
 0x1b3   : > { %1030 = vadd.xlane.f32.xlu0 %v1029_v60 }
 0x1b4   : > { %2237 = vpow2.f32 %v965_v32 }
 0x1b5   : > { %2239 = vpow2.f32 %v971_v1  ;;  %v973_v1 = vld [vmem:[#allocation3] sm:$0xff] }
 0x1b7   : > { %v893_v3 = vpop.permute.xlu1 %892 }
 0x1b8   : > { %v934_v4 = vsub.f32 %v2584_v53, %v893_v3  ;;  %v918_v12 = vpop.permute.xlu0 %917  ;;  %v1089_v3 = vld [vmem:[#allocation4 + $0x18] sm:$0xff] }
 0x1b9   : > { %v939_v39 = vsub.f32 %v2587_v54, %v918_v12 }
 0x1ba   : > { %v2238_v13 = vpop.eup %2237  ;;  %v959_v14 = vmul.f32 1.442695, %v934_v4 }
 0x1bb   : > { %v969_v56 = vmul.f32 1.442695, %v939_v39  ;;  %2085 = vmatmul.msk.f32.vlgmr.msrb.gmra.mxu2 %vm732_vm1, %v2238_v13  ;;  %v1041_v61 = vsel %vm732_vm1, %v2238_v13, 0.0  ;;  %v2240_v16 = vpop.eup %2239  ;;  %v989_v39 = vmul.f32 %v2667_v31, %v973_v1  ;;  %v1185_v13 = vmul.f32 %v2832_v29, %v1089_v3  ;;  %v1094_v3 = vld [vmem:[#allocation4 + $0x40] sm:$0xff] }
 0x1bc   : > { %2241 = vpow2.f32 %v959_v14  ;;  %1042 = vadd.xlane.f32.xlu2 %v1041_v61  ;;  %v1050_v44 = vsel %vm732_vm1, %v2240_v16, 0.0  ;;  %v990_v29 = vmul.f32 %v2728_v11, %v974_v36 }
 0x1bd   : > { %2243 = vpow2.f32 %v969_v56 }
 0x1bf   : > { %v2853_v15 = vpop.permute.xlu1 %1139 }
 0x1c0   : > { %v903_v17 = vpop.permute.xlu0 %902 }
 0x1c1   : > { %v936_v53 = vsub.f32 %v2595_v57, %v903_v17  ;;  %v977_v17 = vld [vmem:[#allocation3 + $0x20] sm:$0xff] }
 0x1c2   : > { %v2242_v37 = vpop.eup %2241  ;;  %v993_v31 = vmul.f32 %v2708_v9, %v977_v17 }
 0x1c3   : > { %v2244_v49 = vpop.eup %2243  ;;  %v963_v54 = vmul.f32 1.442695, %v936_v53  ;;  %2082 = vmatmul.msk.f32.gmra.mxu0 %vm732_vm1, %v2242_v37  ;;  %v1032_v57 = vsel %vm732_vm1, %v2242_v37, 0.0  ;;  %v1086_v53 = vld [vmem:[#allocation4] sm:$0xff] }
 0x1c4   : > { %2087 = vmatmul.msk.f32.vlgmr.msrb.gmra.mxu3 %vm732_vm1, %v2244_v49  ;;  %1051 = vadd.xlane.f32.xlu2 %v1050_v44  ;;  %v1047_v19 = vsel %vm732_vm1, %v2244_v49, 0.0 }
 0x1c5   : > { %2245 = vpow2.f32 %v963_v54  ;;  %1048 = vadd.xlane.f32.xlu1 %v1047_v19  ;;  %v1182_v54 = vmul.f32 %v2815_v2, %v1086_v53  ;;  %v1092_v53 = vld [vmem:[#allocation4 + $0x30] sm:$0xff] }
 0x1c7   : > { %v913_v20 = vpop.permute.xlu1 %912 }
 0x1c8   : > { %v938_v18 = vsub.f32 %v2605_v62, %v913_v20  ;;  %v2867_v62 = vpop.permute.xlu2 %1164  ;;  %v2869_v28 = vpop.permute.xlu0 %1129 }
 0x1ca   : > { %v967_v21 = vmul.f32 1.442695, %v938_v18 }
 0x1cb   : > { %v2246_v33 = vpop.eup %2245 }
 0x1cc   : > { %2247 = vpow2.f32 %v967_v21  ;;  %2084 = vmatmul.msk.f32.gmra.mxu1 %vm732_vm1, %v2246_v33  ;;  %2088 = vmatmul.msk.f32.gmra.mxu3 %vm732_vm1, %v2240_v16  ;;  %v1038_v25 = vsel %vm732_vm1, %v2246_v33, 0.0 }
 0x1cd   : > { %1033 = vadd.xlane.f32.xlu1 %v1032_v57  ;;  %1039 = vadd.xlane.f32.xlu0 %v1038_v25  ;;  %v979_v57 = vld [vmem:[#allocation3 + $0x30] sm:$0xff] }
 0x1ce   : > { %v995_v9 = vmul.f32 %v2711_v10, %v979_v57  ;;  %v978_v10 = vld [vmem:[#allocation3 + $0x28] sm:$0xff] }
 0x1cf   : > { %v2871_v22 = vpop.permute.xlu1 %1154 }
 0x1d0   : > { %v2873_v50 = vpop.permute.xlu2 %1174  ;;  %v2876_v40 = vpop.permute.xlu0 %1144 }
 0x1d2   : > { %v2248_v26 = vpop.eup %2247 }
 0x1d3   : > { %2086 = vmatmul.msk.f32.gmra.mxu2 %vm732_vm1, %v2248_v26  ;;  %v1044_v27 = vsel %vm732_vm1, %v2248_v26, 0.0 }
 0x1d5   : > { %1045 = vadd.xlane.f32.xlu0 %v1044_v27  ;;  %v976_v27 = vld [vmem:[#allocation3 + $0x18] sm:$0xff] }
 0x1d6   : > { %v992_v2 = vmul.f32 %v2735_v24, %v976_v27  ;;  %v983_v24 = vld [vmem:[#allocation3 + $0x50] sm:$0xff]  ;;  %v1091_v27 = vld [vmem:[#allocation4 + $0x28] sm:$0xff] }
 0x1d7   : > { %v2878_v38 = vpop.permute.xlu1 %1149 }
 0x1d8   : > { %v2881_v51 = vpop.permute.xlu2 %1159  ;;  %v2884_v4 = vpop.permute.xlu0 %1169 }
 0x1e0   : > { %v2893_v49 = vpop.permute.xlu0 %1179 }
 0x1f8   : > { %v1250_v43 = vpop.f32.mrf.mxu1 }
 0x1f9   : > { %v1432_v41 = vadd.f32 %v1250_v43, %v1184_v35  ;;  %v1183_v35 = vmul.f32 %v2845_v52, %v1087_v45 }
 0x1fb   : > { %1448 = vst.msk [vmem:[#allocation4 + $0x10] sm:$0xff] %vm370_vm0, %v1432_v41 }
 0x202   : > { %v1013_v32 = vpop.xlane.xlu1 %1012 }
 0x203   : > { %v1055_v60 = vadd.f32 %v1013_v32, %v991_v42 }
 0x205   : > { %1072 = vst.msk [vmem:[#allocation3 + $0x10] sm:$0xff] %vm337_vm2, %v1055_v60  ;;  %v980_v60 = vld [vmem:[#allocation3 + $0x38] sm:$0xff] }
 0x206   : > { %v1279_v12 = vpop.f32.mrf.mxu2  ;;  %v996_v52 = vmul.f32 %v2741_v34, %v980_v60 }
 0x207   : > { %v1434_v14 = vadd.f32 %v1279_v12, %v1186_v23  ;;  %v1007_v56 = vpop.xlane.xlu2 %1006  ;;  %v994_v12 = vmul.f32 %v2752_v47, %v978_v10  ;;  %v981_v47 = vld [vmem:[#allocation3 + $0x40] sm:$0xff] }
 0x208   : > { %v1053_v61 = vadd.f32 %v1007_v56, %v989_v39  ;;  %v1253_v59 = vpop.f32.mrf.mxu1  ;;  %v1190_v39 = vmul.f32 %v2876_v40, %v1094_v3  ;;  %v999_v56 = vmul.f32 %v2768_v58, %v983_v24  ;;  %v1188_v58 = vmul.f32 %v2836_v30, %v1092_v53  ;;  %v1096_v40 = vld [vmem:[#allocation4 + $0x50] sm:$0xff]  ;;  %v1093_v30 = vld [vmem:[#allocation4 + $0x38] sm:$0xff] }
 0x209   : > { %1450 = vst.msk [vmem:[#allocation4 + $0x20] sm:$0xff] %vm370_vm0, %v1434_v14  ;;  %v1433_v16 = vadd.f32 %v1253_v59, %v1185_v13  ;;  %v1192_v57 = vmul.f32 %v2871_v22, %v1096_v40  ;;  %v1187_v22 = vmul.f32 %v2869_v28, %v1091_v27  ;;  %v987_v28 = vld [vmem:[#allocation3 + $0x70] sm:$0xff] }
 0x20a   : > { %1070 = vst.msk [vmem:[#allocation3] sm:$0xff] %vm337_vm2, %v1053_v61  ;;  %v1003_v24 = vmul.f32 %v2770_v63, %v987_v28 }
 0x20b   : > { %1449 = vst.msk [vmem:[#allocation4 + $0x18] sm:$0xff] %vm370_vm0, %v1433_v16 }
 0x20c   : > { %v1499_v37 = vld [vmem:[#allocation3 + $0x10] sm:$0xff] }
 0x20d   : > { %2249 = vrcp.f32 %v1499_v37 }
 0x20f   : > { %v1019_v44 = vpop.xlane.xlu2 %1018  ;;  %v1010_v19 = vpop.xlane.xlu1 %1009 }
 0x210   : > { %v1057_v20 = vadd.f32 %v1019_v44, %v993_v31  ;;  %v1054_v18 = vadd.f32 %v1010_v19, %v990_v29  ;;  %v1221_v21 = vpop.f32.mrf.mxu0 }
 0x211   : > { %v1430_v33 = vadd.f32 %v1221_v21, %v1182_v54  ;;  %v1497_v25 = vld [vmem:[#allocation3] sm:$0xff]  ;;  %v997_v54 = vmul.f32 %v2772_v0, %v981_v47 }
 0x212   : > { %1074 = vst.msk [vmem:[#allocation3 + $0x20] sm:$0xff] %vm337_vm2, %v1057_v20  ;;  %2251 = vrcp.f32 %v1497_v25 }
 0x213   : > { %v2250_v26 = vpop.eup %2249  ;;  %1071 = vst.msk [vmem:[#allocation3 + $0x8] sm:$0xff] %vm337_vm2, %v1054_v18 }
 0x214   : > { %1446 = vst.msk [vmem:[#allocation4] sm:$0xff] %vm370_vm0, %v1430_v33  ;;  %1541 = vperm.xlu1 %2181, %v2250_v26  }
 0x216   : > { %v1025_v11 = vpop.xlane.xlu0 %1024 }
 0x217   : > { %v1059_v43 = vadd.f32 %v1025_v11, %v995_v9  ;;  %v1016_v41 = vpop.xlane.xlu2 %1015  ;;  %v985_v9 = vld [vmem:[#allocation3 + $0x60] sm:$0xff]  ;;  %v1189_v11 = vmul.f32 %v2853_v15, %v1093_v30  ;;  %v988_v15 = vld [vmem:[#allocation3 + $0x78] sm:$0xff] }
 0x218   : > { %v1056_v48 = vadd.f32 %v1016_v41, %v992_v2  ;;  %v1224_v42 = vpop.f32.mrf.mxu0  ;;  %v2252_v1 = vpop.eup %2251 }
 0x219   : > { %1076 = vst.msk [vmem:[#allocation3 + $0x30] sm:$0xff] %vm337_vm2, %v1059_v43  ;;  %v1431_v55 = vadd.f32 %v1224_v42, %v1183_v35  ;;  %v1501_v32 = vld [vmem:[#allocation3 + $0x20] sm:$0xff] }
 0x21a   : > { %1073 = vst.msk [vmem:[#allocation3 + $0x18] sm:$0xff] %vm337_vm2, %v1056_v48  ;;  %2253 = vrcp.f32 %v1501_v32  ;;  %v1498_v44 = vld [vmem:[#allocation3 + $0x8] sm:$0xff]  ;;  %v1001_v48 = vmul.f32 %v2750_v46, %v985_v9  ;;  %v1004_v46 = vmul.f32 %v2790_v8, %v988_v15  ;;  %v2097_v15 = vld [vmem:[%s3038_s3 + $0x18] sm:$0xff] }
 0x21b   : > { %1447 = vst.msk [vmem:[#allocation4 + $0x8] sm:$0xff] %vm370_vm0, %v1431_v55  ;;  %v1095_v8 = vld [vmem:[#allocation4 + $0x48] sm:$0xff]  ;;  %1742 = vmatpush.msra.mxu3 %v2097_v15 }
 0x21c   : > { %1531 = vperm.xlu1 %2181, %v2252_v1  }
 0x21e   : > { %v1028_v23 = vpop.xlane.xlu0 %1027 }
 0x21f   : > { %v1060_v13 = vadd.f32 %v1028_v23, %v996_v52  ;;  %v1022_v14 = vpop.xlane.xlu1 %1021 }
 0x220   : > { %v2254_v61 = vpop.eup %2253  ;;  %v1058_v59 = vadd.f32 %v1022_v14, %v994_v12  ;;  %v1037_v16 = vpop.xlane.xlu2 %1036  ;;  %v1503_v36 = vld [vmem:[#allocation3 + $0x30] sm:$0xff]  ;;  %v1098_v14 = vld [vmem:[#allocation4 + $0x60] sm:$0xff] }
 0x221   : > { %v1337_v17 = vpop.f32.mrf.mxu0  ;;  %1077 = vst.msk [vmem:[#allocation3 + $0x38] sm:$0xff] %vm337_vm2, %v1060_v13  ;;  %v1063_v37 = vadd.f32 %v1037_v16, %v999_v56  ;;  %1551 = vperm.xlu2 %2182, %v2254_v61   ;;  %2255 = vrcp.f32 %v1503_v36  ;;  %v1500_v34 = vld [vmem:[#allocation3 + $0x18] sm:$0xff]  ;;  %v982_v56 = vld [vmem:[#allocation3 + $0x48] sm:$0xff] }
 0x222   : > { %v1438_v31 = vadd.f32 %v1337_v17, %v1190_v39  ;;  %1075 = vst.msk [vmem:[#allocation3 + $0x28] sm:$0xff] %vm337_vm2, %v1058_v59  ;;  %2257 = vrcp.f32 %v1500_v34  ;;  %v984_v61 = vld [vmem:[#allocation3 + $0x58] sm:$0xff]  ;;  %v1194_v59 = vmul.f32 %v2867_v62, %v1098_v14  ;;  %v998_v63 = vmul.f32 %v2781_v5, %v982_v56  ;;  %v986_v5 = vld [vmem:[#allocation3 + $0x68] sm:$0xff] }
 0x223   : > { %1080 = vst.msk [vmem:[#allocation3 + $0x50] sm:$0xff] %vm337_vm2, %v1063_v37  ;;  %2259 = vrcp.f32 %v1498_v44  ;;  %v1000_v36 = vmul.f32 %v2783_v6, %v984_v61  ;;  %v1100_v44 = vld [vmem:[#allocation4 + $0x70] sm:$0xff]  ;;  %v1097_v6 = vld [vmem:[#allocation4 + $0x58] sm:$0xff] }
 0x224   : > { %1454 = vst.msk [vmem:[#allocation4 + $0x40] sm:$0xff] %vm370_vm0, %v1438_v31  ;;  %v1191_v31 = vmul.f32 %v2878_v38, %v1095_v8  ;;  %v1196_v38 = vmul.f32 %v2873_v50, %v1100_v44  ;;  %v1101_v50 = vld [vmem:[#allocation4 + $0x78] sm:$0xff]  ;;  %v2106_v8 = vld [vmem:[%s3038_s3 + $0x30] sm:$0xff] }
 0x225   : > { %v1308_v29 = vpop.f32.mrf.mxu3 }
 0x226   : > { %v1436_v19 = vadd.f32 %v1308_v29, %v1188_v58  ;;  %v1031_v20 = vpop.xlane.xlu0 %1030 }
 0x227   : > { %v2256_v18 = vpop.eup %2255  ;;  %v1061_v21 = vadd.f32 %v1031_v20, %v997_v54  ;;  %v1002_v20 = vmul.f32 %v2785_v7, %v986_v5  ;;  %v1197_v7 = vmul.f32 %v2893_v49, %v1101_v50  ;;  %v2094_v49 = vld [vmem:[%s3038_s3 + $0x10] sm:$0xff] }
 0x228   : > { %v2258_v33 = vpop.eup %2257  ;;  %1452 = vst.msk [vmem:[#allocation4 + $0x30] sm:$0xff] %vm370_vm0, %v1436_v19  ;;  %1561 = vperm.xlu0 %2183, %v2256_v18   ;;  %v1504_v25 = vld [vmem:[#allocation3 + $0x38] sm:$0xff]  ;;  %1709 = vmatpush.msra.mxu2 %v2094_v49 }
 0x229   : > { %1078 = vst.msk [vmem:[#allocation3 + $0x40] sm:$0xff] %vm337_vm2, %v1061_v21  ;;  %v1366_v26 = vpop.f32.mrf.mxu1  ;;  %1546 = vperm.xlu2 %2182, %v2258_v33   ;;  %2261 = vrcp.f32 %v1504_v25  ;;  %v1502_v0 = vld [vmem:[#allocation3 + $0x28] sm:$0xff]  ;;  %v2260_v35 = vpop.eup %2259  ;;  %v1193_v33 = vmul.f32 %v2881_v51, %v1097_v6 }
 0x22a   : > { %v1440_v45 = vadd.f32 %v1366_v26, %v1192_v57  ;;  %2263 = vrcp.f32 %v1502_v0  ;;  %v1507_v53 = vld [vmem:[#allocation3 + $0x50] sm:$0xff]  ;;  %1841 = vmatpush.msrb.mxu2 %v2106_v8 }
 0x22b   : > { %v1489_v5 = vld [vmem:[#allocation4 + $0x40] sm:$0xff] }
 0x22c   : > { %1456 = vst.msk [vmem:[#allocation4 + $0x50] sm:$0xff] %vm370_vm0, %v1440_v45 }
 0x22d   : > { %v1311_v2 = vpop.f32.mrf.mxu3 }
 0x22e   : > { %v1437_v43 = vadd.f32 %v1311_v2, %v1189_v11  ;;  %v1282_v41 = vpop.f32.mrf.mxu2  ;;  %v1099_v2 = vld [vmem:[#allocation4 + $0x68] sm:$0xff] }
 0x22f   : > { %v2262_v42 = vpop.eup %2261  ;;  %v1435_v55 = vadd.f32 %v1282_v41, %v1187_v22  ;;  %v1043_v32 = vpop.xlane.xlu2 %1042 }
 0x230   : > { %v2264_v60 = vpop.eup %2263  ;;  %1453 = vst.msk [vmem:[#allocation4 + $0x38] sm:$0xff] %vm370_vm0, %v1437_v43  ;;  %v1065_v1 = vadd.f32 %v1043_v32, %v1001_v48  ;;  %1566 = vperm.xlu1 %2181, %v2262_v42   ;;  %v1505_v10 = vld [vmem:[#allocation3 + $0x40] sm:$0xff]  ;;  %v1195_v43 = vmul.f32 %v2884_v4, %v1099_v2 }
 0x231   : > { %1451 = vst.msk [vmem:[#allocation4 + $0x28] sm:$0xff] %vm370_vm0, %v1435_v55  ;;  %1536 = vperm.xlu2 %2182, %v2260_v35   ;;  %1556 = vperm.xlu0 %2183, %v2264_v60   ;;  %2265 = vrcp.f32 %v1505_v10  ;;  %v2089_v60 = vld [vmem:[%s3038_s3 + $0x8] sm:$0xff]  ;;  %v1625_v4 = vld [vmem:[%s3038_s3] sm:$0xff] }
 0x232   : > { %1082 = vst.msk [vmem:[#allocation3 + $0x60] sm:$0xff] %vm337_vm2, %v1065_v1  ;;  %1649 = vmatpush.msra.mxu0 %v2089_v60  ;;  %1678 = vmatpush.msra.mxu1 %v1625_v4  ;;  %v1485_v1 = vld [vmem:[#allocation4 + $0x20] sm:$0xff] }
 0x237   : > { %v1052_v3 = vpop.xlane.xlu2 %1051  ;;  %v2266_v52 = vpop.eup %2265 }
 0x238   : > { %v1068_v23 = vadd.f32 %v1052_v3, %v1004_v46  ;;  %v1049_v12 = vpop.xlane.xlu1 %1048  ;;  %v1483_v46 = vld [vmem:[#allocation4 + $0x10] sm:$0xff] }
 0x239   : > { %v1067_v39 = vadd.f32 %v1049_v12, %v1003_v24  ;;  %1571 = vperm.xlu0 %2183, %v2266_v52   ;;  %v1509_v13 = vld [vmem:[#allocation3 + $0x60] sm:$0xff]  ;;  %v2109_v24 = vld [vmem:[%s3038_s3 + $0x38] sm:$0xff] }
 0x23a   : > { %1085 = vst.msk [vmem:[#allocation3 + $0x78] sm:$0xff] %vm337_vm2, %v1068_v23  ;;  %2267 = vrcp.f32 %v1509_v13  ;;  %1874 = vmatpush.msrb.mxu3 %v2109_v24  ;;  %v2100_v12 = vld [vmem:[%s3038_s3 + $0x20] sm:$0xff] }
 0x23b   : > { %1084 = vst.msk [vmem:[#allocation3 + $0x70] sm:$0xff] %vm337_vm2, %v1067_v39  ;;  %2269 = vrcp.f32 %v1507_v53  ;;  %v1484_v39 = vld [vmem:[#allocation4 + $0x18] sm:$0xff]  ;;  %v1481_v13 = vld [vmem:[#allocation4] sm:$0xff]  ;;  %1775 = vmatpush.msrb.mxu0 %v2100_v12 }
 0x23c   : > { %v2184_v24 = vld [vmem:[%s3039_s4] ss:$0 sm:$0xff] }
 0x23e   : > { %v1395_v16 = vpop.f32.mrf.mxu2 }
 0x23f   : > { %v1442_v17 = vadd.f32 %v1395_v16, %v1194_v59  ;;  %v1482_v16 = vld [vmem:[#allocation4 + $0x8] sm:$0xff] }
 0x240   : > { %v2268_v37 = vpop.eup %2267  ;;  %v1034_v34 = vpop.xlane.xlu1 %1033 }
 0x241   : > { %v1040_v47 = vpop.xlane.xlu0 %1039  ;;  %1458 = vst.msk [vmem:[#allocation4 + $0x60] sm:$0xff] %vm370_vm0, %v1442_v17  ;;  %v1062_v58 = vadd.f32 %v1034_v34, %v998_v63  ;;  %v1340_v29 = vpop.f32.mrf.mxu0  ;;  %1591 = vperm.xlu1 %2181, %v2268_v37   ;;  %v1512_v18 = vld [vmem:[#allocation3 + $0x78] sm:$0xff]  ;;  %v1487_v63 = vld [vmem:[#allocation4 + $0x30] sm:$0xff]  ;;  %v2103_v37 = vld [vmem:[%s3038_s3 + $0x28] sm:$0xff] }
 0x242   : > { %v1064_v40 = vadd.f32 %v1040_v47, %v1000_v36  ;;  %v1439_v62 = vadd.f32 %v1340_v29, %v1191_v31  ;;  %v1511_v54 = vld [vmem:[#allocation3 + $0x70] sm:$0xff]  ;;  %v2270_v21 = vpop.eup %2269  ;;  %1808 = vmatpush.msrb.mxu1 %v2103_v37  ;;  %v1488_v31 = vld [vmem:[#allocation4 + $0x38] sm:$0xff] }
 0x243   : > { %1079 = vst.msk [vmem:[#allocation3 + $0x48] sm:$0xff] %vm337_vm2, %v1062_v58  ;;  %2271 = vrcp.f32 %v1511_v54  ;;  %v1486_v58 = vld [vmem:[#allocation4 + $0x28] sm:$0xff] }
 0x244   : > { %1081 = vst.msk [vmem:[#allocation3 + $0x58] sm:$0xff] %vm337_vm2, %v1064_v40  ;;  %2273 = vrcp.f32 %v1512_v18 }
 0x245   : > { %1455 = vst.msk [vmem:[#allocation4 + $0x48] sm:$0xff] %vm370_vm0, %v1439_v62 }
 0x247   : > { %v1424_v19 = vpop.f32.mrf.mxu3 }
 0x248   : > { %v1444_v57 = vadd.f32 %v1424_v19, %v1196_v38  ;;  %v1493_v18 = vld [vmem:[#allocation4 + $0x60] sm:$0xff] }
 0x249   : > { %v1046_v25 = vpop.xlane.xlu0 %1045  ;;  %v2272_v30 = vpop.eup %2271  ;;  %1581 = vperm.xlu1 %2181, %v2270_v21  }
 0x24a   : > { %v1066_v26 = vadd.f32 %v1046_v25, %v1002_v20  ;;  %v1369_v0 = vpop.f32.mrf.mxu1  ;;  %1460 = vst.msk [vmem:[#allocation4 + $0x70] sm:$0xff] %vm370_vm0, %v1444_v57  ;;  %1601 = vperm.xlu2 %2182, %v2272_v30   ;;  %v1506_v45 = vld [vmem:[#allocation3 + $0x48] sm:$0xff]  ;;  %v2274_v9 = vpop.eup %2273  ;;  %v1491_v25 = vld [vmem:[#allocation4 + $0x50] sm:$0xff] }
 0x24b   : > { %v1441_v27 = vadd.f32 %v1369_v0, %v1193_v33  ;;  %2275 = vrcp.f32 %v1506_v45  ;;  %v1508_v42 = vld [vmem:[#allocation3 + $0x58] sm:$0xff] }
 0x24c   : > { %1083 = vst.msk [vmem:[#allocation3 + $0x68] sm:$0xff] %vm337_vm2, %v1066_v26  ;;  %v1490_v20 = vld [vmem:[#allocation4 + $0x48] sm:$0xff] }
 0x24d   : > { %1457 = vst.msk [vmem:[#allocation4 + $0x58] sm:$0xff] %vm370_vm0, %v1441_v27 }
 0x24f   : > { %v1427_v51 = vpop.f32.mrf.mxu3 }
 0x250   : > { %v1445_v11 = vadd.f32 %v1427_v51, %v1197_v7 }
 0x251   : > { %v2276_v22 = vpop.eup %2275  ;;  %1606 = vperm.xlu1 %2181, %v2274_v9   ;;  %v1495_v54 = vld [vmem:[#allocation4 + $0x70] sm:$0xff] }
 0x252   : > { %1461 = vst.msk [vmem:[#allocation4 + $0x78] sm:$0xff] %vm370_vm0, %v1445_v11  ;;  %1576 = vperm.xlu2 %2182, %v2276_v22  }
 0x253   : > { %v1510_v35 = vld [vmem:[#allocation3 + $0x68] sm:$0xff] }
 0x254   : > { %2277 = vrcp.f32 %v1510_v35  ;;  %v1492_v9 = vld [vmem:[#allocation4 + $0x58] sm:$0xff] }
 0x255   : > { %2279 = vrcp.f32 %v1508_v42 }
 0x256   : > { %v1398_v41 = vpop.f32.mrf.mxu2 }
 0x257   : > { %v1443_v48 = vadd.f32 %v1398_v41, %v1195_v43 }
 0x259   : > { %1459 = vst.msk [vmem:[#allocation4 + $0x68] sm:$0xff] %vm370_vm0, %v1443_v48  ;;  %v1496_v0 = vld [vmem:[#allocation4 + $0x78] sm:$0xff] }
 0x25a   : > { %v2278_v55 = vpop.eup %2277 }
 0x25b   : > { %1596 = vperm.xlu0 %2183, %v2278_v55   ;;  %v2280_v32 = vpop.eup %2279 }
 0x260   : > { %v1494_v50 = vld [vmem:[#allocation4 + $0x68] sm:$0xff] }
 0x263   : > { %1586 = vperm.xlu0 %2183, %v2280_v32  }
 0x27b   : > { %v1552_v10 = vpop.permute.xlu2 %1551 }
 0x27c   : > { %v1613_v28 = vmul.f32 %v1552_v10, %v1485_v1 }
 0x27e   : > { %2095 = vmatmul.msk.f32.vlgmr.msra.gmra.mxu2 %vm370_vm0, %v1613_v28 }
 0x283   : > { %v1547_v23 = vpop.permute.xlu2 %1546 }
 0x284   : > { %v1612_v56 = vmul.f32 %v1547_v23, %v1484_v39 }
 0x286   : > { %v1542_v3 = vpop.permute.xlu1 %1541 }
 0x287   : > { %v1611_v52 = vmul.f32 %v1542_v3, %v1483_v46 }
 0x289   : > { %2090 = vmatmul.msk.f32.vlgmr.msra.gmra.mxu0 %vm370_vm0, %v1611_v52 }
 0x28b   : > { %v1537_v59 = vpop.permute.xlu2 %1536 }
 0x28c   : > { %v1610_v17 = vmul.f32 %v1537_v59, %v1482_v16 }
 0x28e   : > { %v1532_v14 = vpop.permute.xlu1 %1531 }
 0x28f   : > { %v1609_v61 = vmul.f32 %v1532_v14, %v1481_v13 }
 0x291   : > { %2091 = vmatmul.msk.f32.gmra.mxu0 %vm370_vm0, %v1612_v56  ;;  %2092 = vmatmul.msk.f32.vlgmr.msra.gmra.mxu1 %vm370_vm0, %v1609_v61 }
 0x299   : > { %2093 = vmatmul.msk.f32.gmra.mxu1 %vm370_vm0, %v1610_v17 }
 0x29a   : > { %v1562_v36 = vpop.permute.xlu0 %1561 }
 0x29b   : > { %v1615_v53 = vmul.f32 %v1562_v36, %v1487_v63 }
 0x29d   : > { %2098 = vmatmul.msk.f32.vlgmr.msra.gmra.mxu3 %vm370_vm0, %v1615_v53 }
 0x2a2   : > { %v1567_v34 = vpop.permute.xlu1 %1566 }
 0x2a3   : > { %v1616_v47 = vmul.f32 %v1567_v34, %v1488_v31  ;;  %v1557_v40 = vpop.permute.xlu0 %1556 }
 0x2a4   : > { %v1614_v29 = vmul.f32 %v1557_v40, %v1486_v58  ;;  %v1602_v62 = vpop.permute.xlu2 %1601 }
 0x2a5   : > { %2099 = vmatmul.msk.f32.gmra.mxu3 %vm370_vm0, %v1616_v47  ;;  %v1623_v44 = vmul.f32 %v1602_v62, %v1495_v54 }
 0x2a6   : > { %2096 = vmatmul.msk.f32.gmra.mxu2 %vm370_vm0, %v1614_v29 }
 0x2ab   : > { %v1572_v6 = vpop.permute.xlu0 %1571 }
 0x2ac   : > { %v1617_v38 = vmul.f32 %v1572_v6, %v1489_v5  ;;  %v1577_v19 = vpop.permute.xlu2 %1576 }
 0x2ad   : > { %2110 = vmatmul.msk.f32.vlgmr.msrb.gmra.mxu3 %vm370_vm0, %v1623_v44  ;;  %v1618_v33 = vmul.f32 %v1577_v19, %v1490_v20 }
 0x2ae   : > { %2101 = vmatmul.msk.f32.vlgmr.msrb.gmra.mxu0 %vm370_vm0, %v1617_v38 }
 0x2b3   : > { %v1592_v21 = vpop.permute.xlu1 %1591 }
 0x2b4   : > { %v1621_v57 = vmul.f32 %v1592_v21, %v1493_v18 }
 0x2b6   : > { %2102 = vmatmul.msk.f32.gmra.mxu0 %vm370_vm0, %v1618_v33  ;;  %2107 = vmatmul.msk.f32.vlgmr.msrb.gmra.mxu2 %vm370_vm0, %v1621_v57 }
 0x2bb   : > { %v1582_v30 = vpop.permute.xlu1 %1581 }
 0x2bc   : > { %v1619_v26 = vmul.f32 %v1582_v30, %v1491_v25 }
 0x2be   : > { %2104 = vmatmul.msk.f32.vlgmr.msrb.gmra.mxu1 %vm370_vm0, %v1619_v26 }
 0x2c3   : > { %v1607_v27 = vpop.permute.xlu1 %1606 }
 0x2c4   : > { %v1624_v45 = vmul.f32 %v1607_v27, %v1496_v0 }
 0x2c6   : > { %2111 = vmatmul.msk.f32.gmra.mxu3 %vm370_vm0, %v1624_v45 }
 0x2cd   : > { %v1597_v7 = vpop.permute.xlu0 %1596 }
 0x2ce   : > { %v1622_v51 = vmul.f32 %v1597_v7, %v1494_v50 }
 0x2d0   : > { %2108 = vmatmul.msk.f32.gmra.mxu2 %vm370_vm0, %v1622_v51 }
 0x2d5   : > { %v1587_v11 = vpop.permute.xlu0 %1586 }
 0x2d6   : > { %v1620_v22 = vmul.f32 %v1587_v11, %v1492_v9 }
 0x2d8   : > { %2105 = vmatmul.msk.f32.gmra.mxu1 %vm370_vm0, %v1620_v22 }
 0x301   : > { %v1711_v41 = vpop.f32.mrf.mxu2 }
 0x306   : > { %v1651_v2 = vpop.f32.mrf.mxu0 }
 0x30e   : > { %v1680_v35 = vpop.f32.mrf.mxu1  ;;  %v1654_v48 = vpop.f32.mrf.mxu0 }
 0x30f   : > { %v1681_v42 = vadd.f32 %v1680_v35, %v1651_v2 }
 0x311   : > { %v1717_v60 = vadd.f32 %v1711_v41, %v1681_v42 }
 0x316   : > { %v1683_v55 = vpop.f32.mrf.mxu1 }
 0x317   : > { %v1684_v39 = vadd.f32 %v1683_v55, %v1654_v48 }
 0x320   : > { %v1744_v43 = vpop.f32.mrf.mxu3 }
 0x321   : > { %v1750_v1 = vadd.f32 %v1744_v43, %v1717_v60 }
 0x328   : > { %v1747_v49 = vpop.f32.mrf.mxu3 }
 0x329   : > { %v1714_v32 = vpop.f32.mrf.mxu2 }
 0x32a   : > { %v1718_v13 = vadd.f32 %v1714_v32, %v1684_v39 }
 0x32b   : > { %v1777_v4 = vpop.f32.mrf.mxu0 }
 0x32c   : > { %v1783_v10 = vadd.f32 %v1777_v4, %v1750_v1  ;;  %v1751_v56 = vadd.f32 %v1747_v49, %v1718_v13 }
 0x330   : > { %v1876_v52 = vpop.f32.mrf.mxu3 }
 0x333   : > { %v1780_v14 = vpop.f32.mrf.mxu0 }
 0x334   : > { %v1784_v61 = vadd.f32 %v1780_v14, %v1751_v56 }
 0x339   : > { %v1843_v46 = vpop.f32.mrf.mxu2 }
 0x33b   : > { %v1810_v15 = vpop.f32.mrf.mxu1 }
 0x33c   : > { %v1816_v28 = vadd.f32 %v1810_v15, %v1783_v10 }
 0x33e   : > { %v1849_v3 = vadd.f32 %v1843_v46, %v1816_v28 }
 0x340   : > { %v1882_v23 = vadd.f32 %v1876_v52, %v1849_v3 }
 0x342   : > { %v1888_v12 = vadd.f32 %v2184_v24, %v1882_v23 }
 0x344   : > { %1891 = vst.msk [vmem:[%s301_s8] sm:$0xff] %vm1890_vm3, %v1888_v12 }
 0x349   : > { %v1879_v63 = vpop.f32.mrf.mxu3 }
 0x353   : > { %v1846_v16 = vpop.f32.mrf.mxu2 }
 0x355   : > { %v1813_v59 = vpop.f32.mrf.mxu1 }
 0x356   : > { %v1817_v8 = vadd.f32 %v1813_v59, %v1784_v61 }
 0x358   : > { %v1850_v17 = vadd.f32 %v1846_v16, %v1817_v8 }
 0x35a   : > { %v1883_v36 = vadd.f32 %v1879_v63, %v1850_v17 }
 0x35c   : > { %v1889_v53 = vadd.f32 %v2184_v24, %v1883_v36 }
 0x35e   : > { %1892 = vst.msk [vmem:[%s301_s8 + $0x8] sm:$0xff] %vm1890_vm3, %v1889_v53 }
 0x35f   : > { %2308 = shalt.err (!%p2305_p5)
}
 0x360   : > { %s2364_s25 = smov 128   ;;  %s2365_s8 = smov 8  }
 0x361   : > { %2121 = dma.vmem_to_hbm [thread:$0]  (%p2436_p4), %s1909_s13, 256, %s1911_s14, %s1894_s21, %s2364_s25, %s2364_s25, %s2365_s8  }
 0x362 PF: > { %p2127_p6 = scmp.ge.s32.totalorder %s2359_s23, 2  ;;  %s1925_s9 = sand.u32 1, %s2339_s18  }
 0x363   : > { %s1926_s10 = scalar_lea.sflag [#allocation6], %s1925_s9 }
 0x364   : > { %p2124_p7 = pnand %p2127_p6, %p2443_p8 }
 0x366   : > { %p2125_p9 = pneg %p2124_p7 }
 0x368   : > { %2334 = dma.done.wait (%p2125_p9), %s1926_s10, 256  }
 0x369   : > { %2336 = vsyncadd (%p2125_p9), %s1926_s10, 4294967040  ;;  %s18_s23 = sadd.s32 1, %s2359_s23   ;;  %s3043_s18 = smov %s2343_s19 }
 0x36a   : > { %p15_p10 = scmp.ge.s32.totalorder %s18_s23, 4   ;;  %s3044_s19 = smov %s2347_s20 }
 0x36b   : > { %s3045_s20 = smov %s2449_s6  ;;  %s3046_s21 = smov %s2355_s22 }
 0x36c   : > { %s3047_s22 = smov %s3049_s26  ;;  %17 = sbr.rel (!%p15_p10) target bundleno = 4 (0x4), region = 96 }
 0x371   :  { %1932 = vsyncpa [#allocation6], 1 }
 0x372   :  { %1934 = vsyncpa [#allocation6 + $0x1], 1 }

</bundles_post_ra>
